<compile_context>
chip_gen: v5e
topology: v5e:2x2
jax: 0.10.0
libtpu: 0.0.40
codegen_flags: <defaults>
</compile_context>

<pallas_src>
import math

import jax
import jax.numpy as jnp
from jax.experimental import pallas as pl
from jax.experimental.pallas import tpu as pltpu


def _round_up(n, m):
    return ((n + m - 1) // m) * m


# --------------------------------------------------------------------------- #
# Kernel                                                                       #
# --------------------------------------------------------------------------- #
def _vae_forward_kernel(
    x_ref, eps_ref,
    w1_ref, b1_ref,
    w2_ref, b2_ref,
    w3_ref, b3_ref,      # fused, lane-padded fc31 || fc32  -> [h_dim2, 2*z_pad]
    w4_ref, b4_ref,      # fc4 weight zero-padded to [z_pad, h_dim2]
    w5_ref, b5_ref,
    w6_ref, b6_ref,
    recon_ref, mulv_ref,
):
    f32 = jnp.float32
    bf16 = jnp.bfloat16
    z_pad = eps_ref.shape[1]          # 128-lane padded latent width

    x = x_ref[...]                    # already bf16 (cast in wrapper)

    # ---- encoder (bf16 matmul inputs, f32 accumulation & elementwise) ----
    h = jnp.dot(x, w1_ref[...], preferred_element_type=f32) + b1_ref[...]
    h = jnp.maximum(h, 0.0)
    h = jnp.dot(h.astype(bf16), w2_ref[...], preferred_element_type=f32) + b2_ref[...]
    h = jnp.maximum(h, 0.0)

    # fused latent head: single matmul, lane-dense [TB, 2*z_pad] result
    mulv = jnp.dot(h.astype(bf16), w3_ref[...], preferred_element_type=f32) + b3_ref[...]
    mu = mulv[:, :z_pad]              # vreg-aligned split
    log_var = mulv[:, z_pad:]

    # ---- sampling (reparameterization trick, f32) ----
    # pad lanes: mu = 0, eps = 0  ->  z pad lanes are exactly 0
    std = jnp.exp(0.5 * log_var)
    z = mu + eps_ref[...] * std

    # ---- decoder (K = z_pad matmul; pad rows of w4 are zero -> same math) ----
    d = jnp.dot(z.astype(bf16), w4_ref[...], preferred_element_type=f32) + b4_ref[...]
    d = jnp.maximum(d, 0.0)
    d = jnp.dot(d.astype(bf16), w5_ref[...], preferred_element_type=f32) + b5_ref[...]
    d = jnp.maximum(d, 0.0)
    recon = jnp.dot(d.astype(bf16), w6_ref[...], preferred_element_type=f32) + b6_ref[...]

    recon_ref[...] = recon
    mulv_ref[...] = mulv


# --------------------------------------------------------------------------- #
# Wrapper                                                                      #
# --------------------------------------------------------------------------- #
def _pick_batch_tile(B):
    """Batch tile: 256 on v6e/v7x (fills 256-wide MXU), 128 on v5e. Prefer
    tiles that divide B (no wrapper-side pad copy) and give >= 2 grid steps
    (keeps both v7x TensorCores busy); always a multiple of 16 (bf16 pack)."""
    try:
        kind = jax.devices()[0].device_kind.lower()
    except Exception:  # pragma: no cover - defensive
        kind = ""
    big = 128 if "v5" in kind else 256
    candidates = [t for t in (256, 128, 64, 32, 16) if t <= big]
    for t in candidates:                       # divisor of B, >= 2 grid steps
        if B % t == 0 and B // t >= 2:
            return t
    for t in candidates:                       # any divisor of B
        if B % t == 0:
            return t
    if B <= big:                               # small batch: pad (cheap) to x16
        return _round_up(max(B, 1), 16)
    return big


def vae_forward(x, eps, params, *, batch_tile=None):
    """x: [B, x_dim] f32 (or bf16), eps: [B, z_dim] f32, params: packed kernel
    params (bf16 weights, f32 biases, lane-padded latent head / fc4)."""
    B, x_dim = x.shape
    z_dim = eps.shape[1]
    h_dim1 = params["w1"].shape[1]
    h_dim2 = params["w2"].shape[1]
    z_pad = params["w3"].shape[1] // 2        # 128-lane padded latent width

    TB = batch_tile if batch_tile is not None else _pick_batch_tile(B)
    Bp = _round_up(B, TB)

    # Feed x as bf16 (halves the dominant input stream; kernel math unchanged).
    x_bf = x.astype(jnp.bfloat16)
    if Bp != B:
        # Only reached for small / non-divisible B (tile selection prefers
        # divisors of B so large batches avoid this extra HBM copy).
        x_bf = jnp.pad(x_bf, ((0, Bp - B), (0, 0)))
    eps_p = jnp.pad(eps.astype(jnp.float32), ((0, Bp - B), (0, z_pad - z_dim)))

    grid = (Bp // TB,)

    def batch_spec(d):
        return pl.BlockSpec((TB, d), lambda i: (i, 0))

    def resident_spec(arr):
        r, c = arr.shape
        return pl.BlockSpec((r, c), lambda i: (0, 0))   # weights stay resident

    weight_args = (
        params["w1"], params["b1"],
        params["w2"], params["b2"],
        params["w3"], params["b3"],
        params["w4"], params["b4"],
        params["w5"], params["b5"],
        params["w6"], params["b6"],
    )

    in_specs = [batch_spec(x_dim), batch_spec(z_pad)] + [
        resident_spec(a) for a in weight_args
    ]
    out_specs = (batch_spec(x_dim), batch_spec(2 * z_pad))

    flops = 2 * Bp * (
        x_dim * h_dim1 + h_dim1 * h_dim2 + h_dim2 * (2 * z_pad)
        + z_pad * h_dim2 + h_dim2 * h_dim1 + h_dim1 * x_dim
    )
    bytes_accessed = (
        Bp * x_dim * 2 + Bp * z_pad * 4
        + sum(int(a.size) * a.dtype.itemsize for a in weight_args)
        + Bp * x_dim * 4 + Bp * 2 * z_pad * 4
    )
    cost = pl.CostEstimate(
        flops=flops, transcendentals=Bp * z_pad, bytes_accessed=bytes_accessed
    )

    recon_p, mulv_p = pl.pallas_call(
        _vae_forward_kernel,
        out_shape=(
            jax.ShapeDtypeStruct((Bp, x_dim), jnp.float32),
            jax.ShapeDtypeStruct((Bp, 2 * z_pad), jnp.float32),
        ),
        grid_spec=pltpu.PrefetchScalarGridSpec(
            num_scalar_prefetch=0,
            grid=grid,
            in_specs=in_specs,
            out_specs=out_specs,
        ),
        compiler_params=pltpu.CompilerParams(
            dimension_semantics=("parallel",),
            vmem_limit_bytes=32 * 1024 * 1024,
        ),
        cost_estimate=cost,
    )(x_bf, eps_p, *weight_args)

    recon = recon_p[:B]
    mu = mulv_p[:B, :z_dim]
    log_var = mulv_p[:B, z_pad:z_pad + z_dim]
    return recon, mu, log_var


# --------------------------------------------------------------------------- #
# Parameters                                                                   #
# --------------------------------------------------------------------------- #
def init_linear(key, in_dim, out_dim):
    """Matches nn.Linear default U(-1/sqrt(in), 1/sqrt(in)); weight stored as
    [in_dim, out_dim] (transposed vs. PyTorch) and cast to bf16."""
    kw, kb = jax.random.split(key)
    bound = 1.0 / math.sqrt(in_dim)
    w = jax.random.uniform(kw, (in_dim, out_dim), jnp.float32, -bound, bound)
    b = jax.random.uniform(kb, (1, out_dim), jnp.float32, -bound, bound)
    return w.astype(jnp.bfloat16), b


def make_vae_params(key, x_dim, h_dim1, h_dim2, z_dim):
    """Logical (unpadded) parameters mirroring the PyTorch module."""
    keys = jax.random.split(key, 7)
    p = {}
    p["w1"], p["b1"] = init_linear(keys[0], x_dim, h_dim1)
    p["w2"], p["b2"] = init_linear(keys[1], h_dim1, h_dim2)
    p["w31"], p["b31"] = init_linear(keys[2], h_dim2, z_dim)   # fc31 (mu)
    p["w32"], p["b32"] = init_linear(keys[3], h_dim2, z_dim)   # fc32 (log_var)
    p["w4"], p["b4"] = init_linear(keys[4], z_dim, h_dim2)
    p["w5"], p["b5"] = init_linear(keys[5], h_dim2, h_dim1)
    p["w6"], p["b6"] = init_linear(keys[6], h_dim1, x_dim)
    return p


def pack_kernel_params(p, z_dim, z_pad=128):
    """Kernel-layout params: fc31||fc32 fused and lane-padded to 2*z_pad lanes
    (mu in lanes [0:z_dim), log_var in lanes [z_pad:z_pad+z_dim), zeros
    elsewhere) and fc4 weight zero-padded to [z_pad, h_dim2]."""
    bf16, f32 = jnp.bfloat16, jnp.float32
    h_dim2 = p["w2"].shape[1]
    w3 = jnp.zeros((h_dim2, 2 * z_pad), bf16)
    w3 = w3.at[:, :z_dim].set(p["w31"]).at[:, z_pad:z_pad + z_dim].set(p["w32"])
    b3 = jnp.zeros((1, 2 * z_pad), f32)
    b3 = b3.at[:, :z_dim].set(p["b31"]).at[:, z_pad:z_pad + z_dim].set(p["b32"])
    w4 = jnp.zeros((z_pad, h_dim2), bf16).at[:z_dim, :].set(p["w4"])
    return {
        "w1": p["w1"], "b1": p["b1"],
        "w2": p["w2"], "b2": p["b2"],
        "w3": w3, "b3": b3,
        "w4": w4, "b4": p["b4"],
        "w5": p["w5"], "b5": p["b5"],
        "w6": p["w6"], "b6": p["b6"],
    }


# --------------------------------------------------------------------------- #
# Plain-JAX reference (unpadded layout, same bf16/f32 numerics)                #
# --------------------------------------------------------------------------- #
def reference_forward(x, eps, p):
    bf16, f32 = jnp.bfloat16, jnp.float32

    def lin(t, w, b):
        return jnp.dot(t.astype(bf16), w, preferred_element_type=f32) + b

    relu = lambda t: jnp.maximum(t, 0.0)
    h = relu(lin(x, p["w1"], p["b1"]))
    h = relu(lin(h, p["w2"], p["b2"]))
    mu = lin(h, p["w31"], p["b31"])
    log_var = lin(h, p["w32"], p["b32"])
    z = mu + eps * jnp.exp(0.5 * log_var)
    d = relu(lin(z, p["w4"], p["b4"]))
    d = relu(lin(d, p["w5"], p["b5"]))
    recon = lin(d, p["w6"], p["b6"])
    return recon, mu, log_var


if __name__ == "__main__":
    # Input like the PyTorch usage: an image batch [N, C, H, W] flattened to
    # [-1, x_dim] inside forward().
    N, C, H, W = 2, 4, 16, 16
    x_dim = C * H * W          # 1024
    h_dim1 = 256
    h_dim2 = 128
    z_dim = 32

    root = jax.random.PRNGKey(0)
    k_param, k_x, k_eps = jax.random.split(root, 3)

    logical = make_vae_params(k_param, x_dim, h_dim1, h_dim2, z_dim)
    packed = pack_kernel_params(logical, z_dim)

    x_img = jax.random.normal(k_x, (N, C, H, W), jnp.float32)
    x = x_img.reshape(-1, x_dim)                              # x.view(-1, x_dim)
    B = x.shape[0]
    eps = jax.random.normal(k_eps, (B, z_dim), jnp.float32)

    recon, mu, log_var = vae_forward(x, eps, packed)
    jax.block_until_ready((recon, mu, log_var))

    # correctness check against bf16-consistent, unpadded plain-JAX reference
    r_ref, mu_ref, lv_ref = reference_forward(x, eps, logical)
    assert recon.shape == (B, x_dim)
    assert mu.shape == (B, z_dim) and log_var.shape == (B, z_dim)
    assert jnp.allclose(recon, r_ref, atol=1e-3, rtol=1e-3)
    assert jnp.allclose(mu, mu_ref, atol=1e-3, rtol=1e-3)
    assert jnp.allclose(log_var, lv_ref, atol=1e-3, rtol=1e-3)

    print("KERNEL_OK")
</pallas_src>

<mosaic_0001>
module attributes {stable_mosaic.version = 11 : i64} {
  func.func @_vae_forward_kernel(%arg0: i32, %arg1: memref<16x1024xbf16, #tpu.memory_space<vmem>>, %arg2: memref<16x128xf32, #tpu.memory_space<vmem>>, %arg3: memref<1024x256xbf16, #tpu.memory_space<vmem>>, %arg4: memref<1x256xf32, #tpu.memory_space<vmem>>, %arg5: memref<256x128xbf16, #tpu.memory_space<vmem>>, %arg6: memref<1x128xf32, #tpu.memory_space<vmem>>, %arg7: memref<128x256xbf16, #tpu.memory_space<vmem>>, %arg8: memref<1x256xf32, #tpu.memory_space<vmem>>, %arg9: memref<128x128xbf16, #tpu.memory_space<vmem>>, %arg10: memref<1x128xf32, #tpu.memory_space<vmem>>, %arg11: memref<128x256xbf16, #tpu.memory_space<vmem>>, %arg12: memref<1x256xf32, #tpu.memory_space<vmem>>, %arg13: memref<256x1024xbf16, #tpu.memory_space<vmem>>, %arg14: memref<1x1024xf32, #tpu.memory_space<vmem>>, %arg15: memref<16x1024xf32, #tpu.memory_space<vmem>>, %arg16: memref<16x256xf32, #tpu.memory_space<vmem>>) attributes {dimension_semantics = [#tpu.dimension_semantics<parallel>], iteration_bounds = array<i64: 1>, scalar_prefetch = 0 : i64, scratch_operands = 0 : i64, tpu.core_type = #tpu.core_type<tc>, window_params = [{transform_indices = @transform_0, window_bounds = array<i64: 16, 1024>}, {transform_indices = @transform_1, window_bounds = array<i64: 16, 128>}, {pipeline_mode = #tpu.pipeline_mode<synchronous>, transform_indices = @transform_2, window_bounds = array<i64: 1024, 256>}, {pipeline_mode = #tpu.pipeline_mode<synchronous>, transform_indices = @transform_3, window_bounds = array<i64: 1, 256>}, {pipeline_mode = #tpu.pipeline_mode<synchronous>, transform_indices = @transform_4, window_bounds = array<i64: 256, 128>}, {pipeline_mode = #tpu.pipeline_mode<synchronous>, transform_indices = @transform_5, window_bounds = array<i64: 1, 128>}, {pipeline_mode = #tpu.pipeline_mode<synchronous>, transform_indices = @transform_6, window_bounds = array<i64: 128, 256>}, {pipeline_mode = #tpu.pipeline_mode<synchronous>, transform_indices = @transform_7, window_bounds = array<i64: 1, 256>}, {pipeline_mode = #tpu.pipeline_mode<synchronous>, transform_indices = @transform_8, window_bounds = array<i64: 128, 128>}, {pipeline_mode = #tpu.pipeline_mode<synchronous>, transform_indices = @transform_9, window_bounds = array<i64: 1, 128>}, {pipeline_mode = #tpu.pipeline_mode<synchronous>, transform_indices = @transform_10, window_bounds = array<i64: 128, 256>}, {pipeline_mode = #tpu.pipeline_mode<synchronous>, transform_indices = @transform_11, window_bounds = array<i64: 1, 256>}, {pipeline_mode = #tpu.pipeline_mode<synchronous>, transform_indices = @transform_12, window_bounds = array<i64: 256, 1024>}, {pipeline_mode = #tpu.pipeline_mode<synchronous>, transform_indices = @transform_13, window_bounds = array<i64: 1, 1024>}, {transform_indices = @transform_14, window_bounds = array<i64: 16, 1024>}, {transform_indices = @transform_15, window_bounds = array<i64: 16, 256>}]} {
    %c0 = arith.constant 0 : index
    %c0_0 = arith.constant 0 : index
    %0 = vector.load %arg1[%c0, %c0_0] : memref<16x1024xbf16, #tpu.memory_space<vmem>>, vector<16x1024xbf16>
    %c0_1 = arith.constant 0 : index
    %c0_2 = arith.constant 0 : index
    %1 = vector.load %arg3[%c0_1, %c0_2] : memref<1024x256xbf16, #tpu.memory_space<vmem>>, vector<1024x256xbf16>
    %cst = arith.constant dense<0.000000e+00> : vector<16x256xf32>
    %2 = tpu.matmul %0, %1, %cst {dimension_numbers = #tpu.dot_dimension_numbers<[1], [0], [0], [1], [0, 0, 1, 1], [], []>} : vector<16x1024xbf16>, vector<1024x256xbf16>, vector<16x256xf32> -> vector<16x256xf32>
    %c0_3 = arith.constant 0 : index
    %c0_4 = arith.constant 0 : index
    %3 = vector.load %arg4[%c0_3, %c0_4] : memref<1x256xf32, #tpu.memory_space<vmem>>, vector<1x256xf32>
    %4 = vector.broadcast %3 : vector<1x256xf32> to vector<16x256xf32>
    %5 = arith.addf %2, %4 : vector<16x256xf32>
    %cst_5 = arith.constant 0.000000e+00 : f32
    %6 = vector.broadcast %cst_5 : f32 to vector<16x256xf32>
    %7 = arith.maximumf %5, %6 : vector<16x256xf32>
    %8 = arith.truncf %7 : vector<16x256xf32> to vector<16x256xbf16>
    %c0_6 = arith.constant 0 : index
    %c0_7 = arith.constant 0 : index
    %9 = vector.load %arg5[%c0_6, %c0_7] : memref<256x128xbf16, #tpu.memory_space<vmem>>, vector<256x128xbf16>
    %cst_8 = arith.constant dense<0.000000e+00> : vector<16x128xf32>
    %10 = tpu.matmul %8, %9, %cst_8 {dimension_numbers = #tpu.dot_dimension_numbers<[1], [0], [0], [1], [0, 0, 1, 1], [], []>} : vector<16x256xbf16>, vector<256x128xbf16>, vector<16x128xf32> -> vector<16x128xf32>
    %c0_9 = arith.constant 0 : index
    %c0_10 = arith.constant 0 : index
    %11 = vector.load %arg6[%c0_9, %c0_10] : memref<1x128xf32, #tpu.memory_space<vmem>>, vector<1x128xf32>
    %12 = vector.broadcast %11 : vector<1x128xf32> to vector<16x128xf32>
    %13 = arith.addf %10, %12 : vector<16x128xf32>
    %cst_11 = arith.constant 0.000000e+00 : f32
    %14 = vector.broadcast %cst_11 : f32 to vector<16x128xf32>
    %15 = arith.maximumf %13, %14 : vector<16x128xf32>
    %16 = arith.truncf %15 : vector<16x128xf32> to vector<16x128xbf16>
    %c0_12 = arith.constant 0 : index
    %c0_13 = arith.constant 0 : index
    %17 = vector.load %arg7[%c0_12, %c0_13] : memref<128x256xbf16, #tpu.memory_space<vmem>>, vector<128x256xbf16>
    %cst_14 = arith.constant dense<0.000000e+00> : vector<16x256xf32>
    %18 = tpu.matmul %16, %17, %cst_14 {dimension_numbers = #tpu.dot_dimension_numbers<[1], [0], [0], [1], [0, 0, 1, 1], [], []>} : vector<16x128xbf16>, vector<128x256xbf16>, vector<16x256xf32> -> vector<16x256xf32>
    %c0_15 = arith.constant 0 : index
    %c0_16 = arith.constant 0 : index
    %19 = vector.load %arg8[%c0_15, %c0_16] : memref<1x256xf32, #tpu.memory_space<vmem>>, vector<1x256xf32>
    %20 = vector.broadcast %19 : vector<1x256xf32> to vector<16x256xf32>
    %21 = arith.addf %18, %20 : vector<16x256xf32>
    %22 = vector.extract_strided_slice %21 {offsets = [0, 0], sizes = [16, 128], strides = [1, 1]} : vector<16x256xf32> to vector<16x128xf32>
    %23 = vector.extract_strided_slice %21 {offsets = [0, 128], sizes = [16, 128], strides = [1, 1]} : vector<16x256xf32> to vector<16x128xf32>
    %cst_17 = arith.constant 5.000000e-01 : f32
    %24 = vector.broadcast %cst_17 : f32 to vector<16x128xf32>
    %25 = arith.mulf %24, %23 : vector<16x128xf32>
    %26 = math.exp %25 : vector<16x128xf32>
    %c0_18 = arith.constant 0 : index
    %c0_19 = arith.constant 0 : index
    %27 = vector.load %arg2[%c0_18, %c0_19] : memref<16x128xf32, #tpu.memory_space<vmem>>, vector<16x128xf32>
    %28 = arith.mulf %27, %26 : vector<16x128xf32>
    %29 = arith.addf %22, %28 : vector<16x128xf32>
    %30 = arith.truncf %29 : vector<16x128xf32> to vector<16x128xbf16>
    %c0_20 = arith.constant 0 : index
    %c0_21 = arith.constant 0 : index
    %31 = vector.load %arg9[%c0_20, %c0_21] : memref<128x128xbf16, #tpu.memory_space<vmem>>, vector<128x128xbf16>
    %cst_22 = arith.constant dense<0.000000e+00> : vector<16x128xf32>
    %32 = tpu.matmul %30, %31, %cst_22 {dimension_numbers = #tpu.dot_dimension_numbers<[1], [0], [0], [1], [0, 0, 1, 1], [], []>} : vector<16x128xbf16>, vector<128x128xbf16>, vector<16x128xf32> -> vector<16x128xf32>
    %c0_23 = arith.constant 0 : index
    %c0_24 = arith.constant 0 : index
    %33 = vector.load %arg10[%c0_23, %c0_24] : memref<1x128xf32, #tpu.memory_space<vmem>>, vector<1x128xf32>
    %34 = vector.broadcast %33 : vector<1x128xf32> to vector<16x128xf32>
    %35 = arith.addf %32, %34 : vector<16x128xf32>
    %cst_25 = arith.constant 0.000000e+00 : f32
    %36 = vector.broadcast %cst_25 : f32 to vector<16x128xf32>
    %37 = arith.maximumf %35, %36 : vector<16x128xf32>
    %38 = arith.truncf %37 : vector<16x128xf32> to vector<16x128xbf16>
    %c0_26 = arith.constant 0 : index
    %c0_27 = arith.constant 0 : index
    %39 = vector.load %arg11[%c0_26, %c0_27] : memref<128x256xbf16, #tpu.memory_space<vmem>>, vector<128x256xbf16>
    %cst_28 = arith.constant dense<0.000000e+00> : vector<16x256xf32>
    %40 = tpu.matmul %38, %39, %cst_28 {dimension_numbers = #tpu.dot_dimension_numbers<[1], [0], [0], [1], [0, 0, 1, 1], [], []>} : vector<16x128xbf16>, vector<128x256xbf16>, vector<16x256xf32> -> vector<16x256xf32>
    %c0_29 = arith.constant 0 : index
    %c0_30 = arith.constant 0 : index
    %41 = vector.load %arg12[%c0_29, %c0_30] : memref<1x256xf32, #tpu.memory_space<vmem>>, vector<1x256xf32>
    %42 = vector.broadcast %41 : vector<1x256xf32> to vector<16x256xf32>
    %43 = arith.addf %40, %42 : vector<16x256xf32>
    %cst_31 = arith.constant 0.000000e+00 : f32
    %44 = vector.broadcast %cst_31 : f32 to vector<16x256xf32>
    %45 = arith.maximumf %43, %44 : vector<16x256xf32>
    %46 = arith.truncf %45 : vector<16x256xf32> to vector<16x256xbf16>
    %c0_32 = arith.constant 0 : index
    %c0_33 = arith.constant 0 : index
    %47 = vector.load %arg13[%c0_32, %c0_33] : memref<256x1024xbf16, #tpu.memory_space<vmem>>, vector<256x1024xbf16>
    %cst_34 = arith.constant dense<0.000000e+00> : vector<16x1024xf32>
    %48 = tpu.matmul %46, %47, %cst_34 {dimension_numbers = #tpu.dot_dimension_numbers<[1], [0], [0], [1], [0, 0, 1, 1], [], []>} : vector<16x256xbf16>, vector<256x1024xbf16>, vector<16x1024xf32> -> vector<16x1024xf32>
    %c0_35 = arith.constant 0 : index
    %c0_36 = arith.constant 0 : index
    %49 = vector.load %arg14[%c0_35, %c0_36] : memref<1x1024xf32, #tpu.memory_space<vmem>>, vector<1x1024xf32>
    %50 = vector.broadcast %49 : vector<1x1024xf32> to vector<16x1024xf32>
    %51 = arith.addf %48, %50 : vector<16x1024xf32>
    %c0_37 = arith.constant 0 : index
    %c0_38 = arith.constant 0 : index
    %52 = vector.load %arg15[%c0_37, %c0_38] : memref<16x1024xf32, #tpu.memory_space<vmem>>, vector<16x1024xf32>
    tpu.vector_store %arg15[%c0_37, %c0_38], %51 {strides = array<i32>} : memref<16x1024xf32, #tpu.memory_space<vmem>>, vector<16x1024xf32>,
    %c0_39 = arith.constant 0 : index
    %c0_40 = arith.constant 0 : index
    %53 = vector.load %arg16[%c0_39, %c0_40] : memref<16x256xf32, #tpu.memory_space<vmem>>, vector<16x256xf32>
    tpu.vector_store %arg16[%c0_39, %c0_40], %21 {strides = array<i32>} : memref<16x256xf32, #tpu.memory_space<vmem>>, vector<16x256xf32>,
    return
  }
  func.func @transform_0(%arg0: i32) -> (i32, i32) {
    %c0_i32 = arith.constant 0 : i32
    %c0_i32_0 = arith.constant 0 : i32
    return %arg0, %c0_i32 : i32, i32
  }
  func.func @transform_1(%arg0: i32) -> (i32, i32) {
    %c0_i32 = arith.constant 0 : i32
    %c0_i32_0 = arith.constant 0 : i32
    return %arg0, %c0_i32 : i32, i32
  }
  func.func @transform_2(%arg0: i32) -> (i32, i32) {
    %c0_i32 = arith.constant 0 : i32
    %c0_i32_0 = arith.constant 0 : i32
    %c0_i32_1 = arith.constant 0 : i32
    return %c0_i32, %c0_i32_0 : i32, i32
  }
  func.func @transform_3(%arg0: i32) -> (i32, i32) {
    %c0_i32 = arith.constant 0 : i32
    %c0_i32_0 = arith.constant 0 : i32
    %c0_i32_1 = arith.constant 0 : i32
    return %c0_i32, %c0_i32_0 : i32, i32
  }
  func.func @transform_4(%arg0: i32) -> (i32, i32) {
    %c0_i32 = arith.constant 0 : i32
    %c0_i32_0 = arith.constant 0 : i32
    %c0_i32_1 = arith.constant 0 : i32
    return %c0_i32, %c0_i32_0 : i32, i32
  }
  func.func @transform_5(%arg0: i32) -> (i32, i32) {
    %c0_i32 = arith.constant 0 : i32
    %c0_i32_0 = arith.constant 0 : i32
    %c0_i32_1 = arith.constant 0 : i32
    return %c0_i32, %c0_i32_0 : i32, i32
  }
  func.func @transform_6(%arg0: i32) -> (i32, i32) {
    %c0_i32 = arith.constant 0 : i32
    %c0_i32_0 = arith.constant 0 : i32
    %c0_i32_1 = arith.constant 0 : i32
    return %c0_i32, %c0_i32_0 : i32, i32
  }
  func.func @transform_7(%arg0: i32) -> (i32, i32) {
    %c0_i32 = arith.constant 0 : i32
    %c0_i32_0 = arith.constant 0 : i32
    %c0_i32_1 = arith.constant 0 : i32
    return %c0_i32, %c0_i32_0 : i32, i32
  }
  func.func @transform_8(%arg0: i32) -> (i32, i32) {
    %c0_i32 = arith.constant 0 : i32
    %c0_i32_0 = arith.constant 0 : i32
    %c0_i32_1 = arith.constant 0 : i32
    return %c0_i32, %c0_i32_0 : i32, i32
  }
  func.func @transform_9(%arg0: i32) -> (i32, i32) {
    %c0_i32 = arith.constant 0 : i32
    %c0_i32_0 = arith.constant 0 : i32
    %c0_i32_1 = arith.constant 0 : i32
    return %c0_i32, %c0_i32_0 : i32, i32
  }
  func.func @transform_10(%arg0: i32) -> (i32, i32) {
    %c0_i32 = arith.constant 0 : i32
    %c0_i32_0 = arith.constant 0 : i32
    %c0_i32_1 = arith.constant 0 : i32
    return %c0_i32, %c0_i32_0 : i32, i32
  }
  func.func @transform_11(%arg0: i32) -> (i32, i32) {
    %c0_i32 = arith.constant 0 : i32
    %c0_i32_0 = arith.constant 0 : i32
    %c0_i32_1 = arith.constant 0 : i32
    return %c0_i32, %c0_i32_0 : i32, i32
  }
  func.func @transform_12(%arg0: i32) -> (i32, i32) {
    %c0_i32 = arith.constant 0 : i32
    %c0_i32_0 = arith.constant 0 : i32
    %c0_i32_1 = arith.constant 0 : i32
    return %c0_i32, %c0_i32_0 : i32, i32
  }
  func.func @transform_13(%arg0: i32) -> (i32, i32) {
    %c0_i32 = arith.constant 0 : i32
    %c0_i32_0 = arith.constant 0 : i32
    %c0_i32_1 = arith.constant 0 : i32
    return %c0_i32, %c0_i32_0 : i32, i32
  }
  func.func @transform_14(%arg0: i32) -> (i32, i32) {
    %c0_i32 = arith.constant 0 : i32
    %c0_i32_0 = arith.constant 0 : i32
    return %arg0, %c0_i32 : i32, i32
  }
  func.func @transform_15(%arg0: i32) -> (i32, i32) {
    %c0_i32 = arith.constant 0 : i32
    %c0_i32_0 = arith.constant 0 : i32
    return %arg0, %c0_i32 : i32, i32
  }
}

</mosaic_0001>

<bundles_post_ra>
// kernel: tpu_custom_call.1
= control target key start
LH: loop header
LB: loop body
LE: loop exit
PB: predicated region body
PF: predicated region fallthrough
CT: control target
= control target key end

     0   :  { %21 = vsyncpa [#allocation3], 0  ;;  %s5064_s0 = inlined_call_operand.hbm [shape: bf16[16,1024], index: 0, kind: input, shape index: {}]   ;;  %s5065_s1 = inlined_call_operand.hbm [shape: f32[16,128], index: 1, kind: input, shape index: {}]   ;;  %s5066_s2 = inlined_call_operand.hbm [shape: bf16[1024,256], index: 2, kind: input, shape index: {}]   ;;  %s5067_s3 = inlined_call_operand.vmem [shape: f32[1,256], index: 3, kind: input, shape index: {}]   ;;  %s5068_s4 = inlined_call_operand.hbm [shape: bf16[256,128], index: 4, kind: input, shape index: {}]   ;;  %s5069_s5 = inlined_call_operand.hbm [shape: f32[1,128], index: 5, kind: input, shape index: {}]   ;;  %s5070_s6 = inlined_call_operand.hbm [shape: bf16[128,256], index: 6, kind: input, shape index: {}]   ;;  %s5071_s7 = inlined_call_operand.vmem [shape: f32[1,256], index: 7, kind: input, shape index: {}]   ;;  %s5072_s8 = inlined_call_operand.hbm [shape: bf16[128,128], index: 8, kind: input, shape index: {}]   ;;  %s5073_s9 = inlined_call_operand.hbm [shape: f32[1,128], index: 9, kind: input, shape index: {}]   ;;  %s5074_s10 = inlined_call_operand.hbm [shape: bf16[128,256], index: 10, kind: input, shape index: {}]   ;;  %s5075_s11 = inlined_call_operand.hbm [shape: f32[1,256], index: 11, kind: input, shape index: {}]   ;;  %s5076_s12 = inlined_call_operand.hbm [shape: bf16[256,1024], index: 12, kind: input, shape index: {}]   ;;  %s5077_s13 = inlined_call_operand.vmem [shape: f32[1,1024], index: 13, kind: input, shape index: {}]   ;;  %s5078_s14 = inlined_call_operand.hbm [shape: f32[16,1024], index: 14, kind: output, shape index: {0}]   ;;  %s5079_s15 = inlined_call_operand.hbm [shape: f32[16,256], index: 15, kind: output, shape index: {1}]  }
   0x1   :  { %22 = vsyncpa [#allocation6], 0 }
   0x2   :  { %23 = vsyncpa [#allocation9], 0 }
   0x3   :  { %24 = vsyncpa [#allocation12], 0 }
   0x4   :  { %25 = vsyncpa [#allocation15], 0 }
   0x5   :  { %26 = vsyncpa [#allocation18], 0 }
   0x6   :  { %27 = vsyncpa [#allocation4], 0  ;;  %s46_s20 = sshll.u32 %s5065_s1, 4  ;;  %s47_s20 = int_to_ptr.hbm [resolvable:$true] %s46_s20 }
   0x7   :  { %28 = vsyncpa [#allocation22], 0  ;;  %s4823_s21 = smov [#allocation5]   ;;  %s74_s25 = sshll.u32 %s5068_s4, 4  ;;  %s75_s25 = int_to_ptr.hbm [resolvable:$true] %s74_s25 }
   0x8   :  { %s48_s22 = sshll.u32 %s4823_s21, 4  ;;  %s4824_s26 = smov 128   ;;  %s49_s22 = int_to_ptr.vmem [resolvable:$true] %s48_s22 }
   0x9   :  { %s4825_s27 = smov 8   ;;  %s4826_s28 = smov [#allocation8]  }
   0xa   :  { %54 = dma.hbm_to_vmem [thread:$0]  %s47_s20, 256, %s49_s22, [#allocation6], %s4824_s26, %s4824_s26, %s4825_s27  }
   0xb   :  { %s76_s29 = sshll.u32 %s4826_s28, 4  ;;  %s4827_s1 = smov 64   ;;  %s77_s29 = int_to_ptr.vmem [resolvable:$true] %s76_s29 }
   0xc   :  { %s4828_s30 = smov 4   ;;  %s98_s4 = sshll.u32 %s5070_s6, 4  ;;  %s99_s4 = int_to_ptr.hbm [resolvable:$true] %s98_s4 }
   0xd   :  { %82 = dma.hbm_to_vmem [thread:$0]  %s75_s25, 2048, %s77_s29, [#allocation9], %s4827_s1, %s4827_s1, %s4828_s30  }
   0xe   :  { %s4829_s18 = smov [#allocation11]   ;;  %s127_s22 = sshll.u32 %s5073_s9, 4  ;;  %s128_s22 = int_to_ptr.hbm [resolvable:$true] %s127_s22 }
   0xf   :  { %s100_s19 = sshll.u32 %s4829_s18, 4  ;;  %s4830_s23 = smov [#allocation14]   ;;  %s101_s19 = int_to_ptr.vmem [resolvable:$true] %s100_s19 }
  0x10   :  { %106 = dma.hbm_to_vmem [thread:$0]  %s99_s4, 2048, %s101_s19, [#allocation12], %s4824_s26, %s4824_s26, %s4825_s27  }
  0x11   :  { %s129_s24 = sshll.u32 %s4830_s23, 4  ;;  %s151_s29 = sshll.u32 %s5075_s11, 4  ;;  %s130_s24 = int_to_ptr.vmem [resolvable:$true] %s129_s24  ;;  %s152_s29 = int_to_ptr.hbm [resolvable:$true] %s151_s29 }
  0x12   :  { %132 = dma.hbm_to_vmem [thread:$0]  %s128_s22, 16, %s130_s24, [#allocation15]  }
  0x13   :  { %s33_s17 = sshll.u32 %s5064_s0, 4  ;;  %s4831_s18 = smov [#allocation17]   ;;  %s34_s17 = int_to_ptr.hbm [resolvable:$true] %s33_s17 }
  0x14   :  { %s153_s9 = sshll.u32 %s4831_s18, 4  ;;  %s4832_s4 = smov [#allocation2]   ;;  %s154_s9 = int_to_ptr.vmem [resolvable:$true] %s153_s9 }
  0x15   :  { %156 = dma.hbm_to_vmem [thread:$0]  %s152_s29, 32, %s154_s9, [#allocation18]  }
  0x16   :  { %s35_s19 = sshll.u32 %s4832_s4, 4  ;;  %s4833_s21 = smov 512   ;;  %s36_s19 = int_to_ptr.vmem [resolvable:$true] %s35_s19 }
  0x17   :  { %s4834_s20 = smov 32   ;;  %s59_s23 = sshll.u32 %s5066_s2, 4  ;;  %s60_s23 = int_to_ptr.hbm [resolvable:$true] %s59_s23 }
  0x18   :  { %41 = dma.hbm_to_vmem [thread:$0]  %s34_s17, 1024, %s36_s19, [#allocation3], %s4833_s21, %s4833_s21, %s4834_s20  }
  0x19   :  { %s4835_s0 = smov [#allocation7]   ;;  %s88_s29 = sshll.u32 %s5069_s5, 4  ;;  %s89_s29 = int_to_ptr.hbm [resolvable:$true] %s88_s29 }
  0x1a   :  { %s61_s24 = sshll.u32 %s4835_s0, 4  ;;  %s4836_s6 = smov [#allocation10]   ;;  %s62_s24 = int_to_ptr.vmem [resolvable:$true] %s61_s24 }
  0x1b   :  { %67 = dma.hbm_to_vmem [thread:$0]  %s60_s23, 16384, %s62_s24, [#allocation6], %s4824_s26, %s4824_s26, %s4825_s27  }
  0x1c   :  { %s90_s16 = sshll.u32 %s4836_s6, 4  ;;  %s113_s9 = sshll.u32 %s5072_s8, 4  ;;  %s91_s16 = int_to_ptr.vmem [resolvable:$true] %s90_s16  ;;  %s114_s9 = int_to_ptr.hbm [resolvable:$true] %s113_s9 }
  0x1d   :  { %93 = dma.hbm_to_vmem [thread:$0]  %s89_s29, 16, %s91_s16, [#allocation9]  }
  0x1e   :  { %s137_s19 = sshll.u32 %s5074_s10, 4  ;;  %s4837_s11 = smov [#allocation13]   ;;  %s138_s19 = int_to_ptr.hbm [resolvable:$true] %s137_s19 }
  0x1f   :  { %s115_s5 = sshll.u32 %s4837_s11, 4  ;;  %s4838_s22 = smov [#allocation16]   ;;  %s116_s5 = int_to_ptr.vmem [resolvable:$true] %s115_s5 }
  0x20   :  { %121 = dma.hbm_to_vmem [thread:$0]  %s114_s9, 1024, %s116_s5, [#allocation12], %s4827_s1, %s4827_s1, %s4828_s30  }
  0x21   :  { %s139_s23 = sshll.u32 %s4838_s22, 4  ;;  %s161_s8 = sshll.u32 %s5076_s12, 4  ;;  %s140_s23 = int_to_ptr.vmem [resolvable:$true] %s139_s23  ;;  %s162_s8 = int_to_ptr.hbm [resolvable:$true] %s161_s8 }
  0x22   :  { %145 = dma.hbm_to_vmem [thread:$0]  %s138_s19, 2048, %s140_s23, [#allocation15], %s4824_s26, %s4824_s26, %s4825_s27  }
  0x23   :  { %s4839_s10 = smov [#allocation19]  }
  0x24   :  { %s163_s25 = sshll.u32 %s4839_s10, 4  ;;  %s164_s25 = int_to_ptr.vmem [resolvable:$true] %s163_s25 }
  0x25   :  { %169 = dma.hbm_to_vmem [thread:$0]  %s162_s8, 16384, %s164_s25, [#allocation18], %s4833_s21, %s4833_s21, %s4834_s20  }
  0x26   :  { %4807 = dma.done.wait [#allocation3], 1024  }
  0x27   :  { %4808 = vsyncadd [#allocation3], 4294966272 }
  0x28   :  { %4809 = dma.done.wait [#allocation6], 16640  }
  0x29   :  { %4810 = vsyncadd [#allocation6], 4294950656 }
  0x2a   :  { %4811 = dma.done.wait [#allocation9], 2064  }
  0x2b   :  { %4812 = vsyncadd [#allocation9], 4294965232 }
  0x2c   :  { %4813 = dma.done.wait [#allocation12], 3072  }
  0x2d   :  { %4814 = vsyncadd [#allocation12], 4294964224 }
  0x2e   :  { %4815 = dma.done.wait [#allocation15], 2064  }
  0x2f   :  { %4816 = vsyncadd [#allocation15], 4294965232 }
  0x30   :  { %4817 = dma.done.wait [#allocation18], 16416  }
  0x31   :  { %4818 = vsyncadd [#allocation18], 4294950880  ;;  %v2957_v0 = vld [vmem:[#allocation7 + $0x70] sm:$0xf]  ;;  %v4170_v1 = vld [vmem:[#allocation7 + $0x74] sm:$0xf0] }
  0x32   :  { %v3021_v2 = vld [vmem:[#allocation7 + $0xf0] sm:$0xf]  ;;  %v2958_v3 = vor.u32 %v4170_v1, %v2957_v0  ;;  %v4186_v4 = vld [vmem:[#allocation7 + $0xf4] sm:$0xf0]  ;;  %v2949_v11 = vld [vmem:[#allocation7 + $0x60] sm:$0xf] }
  0x33   :  { %v3085_v5 = vld [vmem:[#allocation7 + $0x170] sm:$0xf]  ;;  %v4202_v6 = vld [vmem:[#allocation7 + $0x174] sm:$0xf0]  ;;  %v3022_v7 = vor.u32 %v4186_v4, %v3021_v2  ;;  %v4168_v13 = vld [vmem:[#allocation7 + $0x64] sm:$0xf0] }
  0x34   :  { %v3086_v8 = vor.u32 %v4202_v6, %v3085_v5  ;;  %v3149_v9 = vld [vmem:[#allocation7 + $0x1f0] sm:$0xf]  ;;  %v4218_v10 = vld [vmem:[#allocation7 + $0x1f4] sm:$0xf0]  ;;  %1038 = vmatpush.bf16.msra.mxu0 %v2958_v3  ;;  %v3013_v14 = vld [vmem:[#allocation7 + $0xe0] sm:$0xf]  ;;  %v2950_v16 = vor.u32 %v4168_v13, %v2949_v11 }
  0x35   :  { %v3150_v12 = vor.u32 %v4218_v10, %v3149_v9  ;;  %v4184_v15 = vld [vmem:[#allocation7 + $0xe4] sm:$0xf0]  ;;  %1052 = vmatpush.bf16.msra.mxu1 %v3022_v7  ;;  %v3077_v18 = vld [vmem:[#allocation7 + $0x160] sm:$0xf]  ;;  %v2941_v23 = vld [vmem:[#allocation7 + $0x50] sm:$0xf] }
  0x36   :  { %1066 = vmatpush.bf16.msra.mxu2 %v3086_v8  ;;  %v3014_v17 = vor.u32 %v4184_v15, %v3013_v14  ;;  %v4200_v19 = vld [vmem:[#allocation7 + $0x164] sm:$0xf0]  ;;  %v3141_v20 = vld [vmem:[#allocation7 + $0x1e0] sm:$0xf]  ;;  %v4166_v24 = vld [vmem:[#allocation7 + $0x54] sm:$0xf0] }
  0x37   :  { %1080 = vmatpush.bf16.msra.mxu3 %v3150_v12  ;;  %v3078_v21 = vor.u32 %v4200_v19, %v3077_v18  ;;  %v4216_v22 = vld [vmem:[#allocation7 + $0x1e4] sm:$0xf0]  ;;  %v3005_v26 = vld [vmem:[#allocation7 + $0xd0] sm:$0xf]  ;;  %v4182_v27 = vld [vmem:[#allocation7 + $0xd4] sm:$0xf0]  ;;  %v2942_v29 = vor.u32 %v4166_v24, %v2941_v23 }
  0x38   :  { %v3142_v25 = vor.u32 %v4216_v22, %v3141_v20  ;;  %v3069_v28 = vld [vmem:[#allocation7 + $0x150] sm:$0xf]  ;;  %1039 = vmatpush.bf16.msra.mxu0 %v2950_v16  ;;  %v4198_v30 = vld [vmem:[#allocation7 + $0x154] sm:$0xf0]  ;;  %v3006_v33 = vor.u32 %v4182_v27, %v3005_v26  ;;  %v2933_v35 = vld [vmem:[#allocation7 + $0x40] sm:$0xf] }
  0x39   :  { %v3133_v31 = vld [vmem:[#allocation7 + $0x1d0] sm:$0xf]  ;;  %v4214_v32 = vld [vmem:[#allocation7 + $0x1d4] sm:$0xf0]  ;;  %1053 = vmatpush.bf16.msra.mxu1 %v3014_v17  ;;  %v3070_v34 = vor.u32 %v4198_v30, %v3069_v28  ;;  %v4164_v36 = vld [vmem:[#allocation7 + $0x44] sm:$0xf0] }
  0x3a   :  { %1067 = vmatpush.bf16.msra.mxu2 %v3078_v21  ;;  %v2997_v37 = vld [vmem:[#allocation7 + $0xc0] sm:$0xf]  ;;  %v3134_v38 = vor.u32 %v4214_v32, %v3133_v31  ;;  %v4180_v39 = vld [vmem:[#allocation7 + $0xc4] sm:$0xf0]  ;;  %v2934_v44 = vor.u32 %v4164_v36, %v2933_v35  ;;  %v2925_v47 = vld [vmem:[#allocation7 + $0x30] sm:$0xf] }
  0x3b   :  { %1081 = vmatpush.bf16.msra.mxu3 %v3142_v25  ;;  %v3061_v40 = vld [vmem:[#allocation7 + $0x140] sm:$0xf]  ;;  %v4196_v41 = vld [vmem:[#allocation7 + $0x144] sm:$0xf0]  ;;  %v2998_v45 = vor.u32 %v4180_v39, %v2997_v37  ;;  %v4162_v48 = vld [vmem:[#allocation7 + $0x34] sm:$0xf0] }
  0x3c   :  { %v3125_v42 = vld [vmem:[#allocation7 + $0x1c0] sm:$0xf]  ;;  %v4212_v43 = vld [vmem:[#allocation7 + $0x1c4] sm:$0xf0]  ;;  %1040 = vmatpush.bf16.msra.mxu0 %v2942_v29  ;;  %v3062_v46 = vor.u32 %v4196_v41, %v3061_v40  ;;  %v2989_v49 = vld [vmem:[#allocation7 + $0xb0] sm:$0xf]  ;;  %v2926_v56 = vor.u32 %v4162_v48, %v2925_v47 }
  0x3d   :  { %1054 = vmatpush.bf16.msra.mxu1 %v3006_v33  ;;  %v3126_v50 = vor.u32 %v4212_v43, %v3125_v42  ;;  %v4178_v51 = vld [vmem:[#allocation7 + $0xb4] sm:$0xf0]  ;;  %v3053_v52 = vld [vmem:[#allocation7 + $0x130] sm:$0xf]  ;;  %v2917_v59 = vld [vmem:[#allocation7 + $0x20] sm:$0xf] }
  0x3e   :  { %1068 = vmatpush.bf16.msra.mxu2 %v3070_v34  ;;  %v4194_v53 = vld [vmem:[#allocation7 + $0x134] sm:$0xf0]  ;;  %v3117_v54 = vld [vmem:[#allocation7 + $0x1b0] sm:$0xf]  ;;  %v2990_v57 = vor.u32 %v4178_v51, %v2989_v49  ;;  %v4160_v60 = vld [vmem:[#allocation7 + $0x24] sm:$0xf0] }
  0x3f   :  { %1082 = vmatpush.bf16.msra.mxu3 %v3134_v38  ;;  %v4210_v55 = vld [vmem:[#allocation7 + $0x1b4] sm:$0xf0]  ;;  %v3054_v58 = vor.u32 %v4194_v53, %v3053_v52  ;;  %v2981_v61 = vld [vmem:[#allocation7 + $0xa0] sm:$0xf]  ;;  %v4176_v63 = vld [vmem:[#allocation7 + $0xa4] sm:$0xf0]  ;;  %v2918_v4 = vor.u32 %v4160_v60, %v2917_v59 }
  0x40   :  { %1041 = vmatpush.bf16.msra.mxu0 %v2934_v44  ;;  %v3118_v62 = vor.u32 %v4210_v55, %v3117_v54  ;;  %v3045_v0 = vld [vmem:[#allocation7 + $0x120] sm:$0xf]  ;;  %v4192_v1 = vld [vmem:[#allocation7 + $0x124] sm:$0xf0]  ;;  %v2982_v5 = vor.u32 %v4176_v63, %v2981_v61  ;;  %v2909_v7 = vld [vmem:[#allocation7 + $0x10] sm:$0xf] }
  0x41   :  { %1055 = vmatpush.bf16.msra.mxu1 %v2998_v45  ;;  %v3109_v2 = vld [vmem:[#allocation7 + $0x1a0] sm:$0xf]  ;;  %v4208_v3 = vld [vmem:[#allocation7 + $0x1a4] sm:$0xf0]  ;;  %v3046_v6 = vor.u32 %v4192_v1, %v3045_v0  ;;  %v4158_v8 = vld [vmem:[#allocation7 + $0x14] sm:$0xf0] }
  0x42   :  { %1069 = vmatpush.bf16.msra.mxu2 %v3062_v46  ;;  %v2973_v9 = vld [vmem:[#allocation7 + $0x90] sm:$0xf]  ;;  %v3110_v10 = vor.u32 %v4208_v3, %v3109_v2  ;;  %v4174_v11 = vld [vmem:[#allocation7 + $0x94] sm:$0xf0]  ;;  %v2910_v16 = vor.u32 %v4158_v8, %v2909_v7  ;;  %v2901_v17 = vld [vmem:[#allocation7] sm:$0xf] }
  0x43   :  { %1083 = vmatpush.bf16.msra.mxu3 %v3126_v50  ;;  %v3037_v12 = vld [vmem:[#allocation7 + $0x110] sm:$0xf]  ;;  %v4190_v13 = vld [vmem:[#allocation7 + $0x114] sm:$0xf0]  ;;  %v4156_v18 = vld [vmem:[#allocation7 + $0x4] sm:$0xf0]  ;;  %v2974_v19 = vor.u32 %v4174_v11, %v2973_v9 }
  0x44   :  { %1042 = vmatpush.bf16.msra.mxu0 %v2926_v56  ;;  %v3101_v14 = vld [vmem:[#allocation7 + $0x190] sm:$0xf]  ;;  %v4206_v15 = vld [vmem:[#allocation7 + $0x194] sm:$0xf0]  ;;  %v3038_v20 = vor.u32 %v4190_v13, %v3037_v12  ;;  %v2965_v21 = vld [vmem:[#allocation7 + $0x80] sm:$0xf]  ;;  %v2902_v31 = vor.u32 %v4156_v18, %v2901_v17 }
  0x45   :  { %1056 = vmatpush.bf16.msra.mxu1 %v2990_v57  ;;  %v4172_v22 = vld [vmem:[#allocation7 + $0x84] sm:$0xf0]  ;;  %v3029_v23 = vld [vmem:[#allocation7 + $0x100] sm:$0xf]  ;;  %v3102_v24 = vor.u32 %v4206_v15, %v3101_v14  ;;  %v3213_v28 = vld [vmem:[#allocation7 + $0x270] sm:$0xf] }
  0x46   :  { %1070 = vmatpush.bf16.msra.mxu2 %v3054_v58  ;;  %v4188_v25 = vld [vmem:[#allocation7 + $0x104] sm:$0xf0]  ;;  %v3093_v26 = vld [vmem:[#allocation7 + $0x180] sm:$0xf]  ;;  %v4234_v29 = vld [vmem:[#allocation7 + $0x274] sm:$0xf0]  ;;  %v2966_v35 = vor.u32 %v4172_v22, %v2965_v21 }
  0x47   :  { %1084 = vmatpush.bf16.msra.mxu3 %v3118_v62  ;;  %v4204_v27 = vld [vmem:[#allocation7 + $0x184] sm:$0xf0]  ;;  %v3277_v30 = vld [vmem:[#allocation7 + $0x2f0] sm:$0xf]  ;;  %v4250_v32 = vld [vmem:[#allocation7 + $0x2f4] sm:$0xf0]  ;;  %v3030_v36 = vor.u32 %v4188_v25, %v3029_v23  ;;  %v3214_v40 = vor.u32 %v4234_v29, %v3213_v28 }
  0x48   :  { %1043 = vmatpush.bf16.msra.mxu0 %v2918_v4  ;;  %v3341_v33 = vld [vmem:[#allocation7 + $0x370] sm:$0xf]  ;;  %v4266_v34 = vld [vmem:[#allocation7 + $0x374] sm:$0xf0]  ;;  %v3094_v39 = vor.u32 %v4204_v27, %v3093_v26  ;;  %v3205_v41 = vld [vmem:[#allocation7 + $0x260] sm:$0xf]  ;;  %v3278_v43 = vor.u32 %v4250_v32, %v3277_v30 }
  0x49   :  { %1057 = vmatpush.bf16.msra.mxu1 %v2982_v5  ;;  %v3405_v37 = vld [vmem:[#allocation7 + $0x3f0] sm:$0xf]  ;;  %v4282_v38 = vld [vmem:[#allocation7 + $0x3f4] sm:$0xf0]  ;;  %v4232_v42 = vld [vmem:[#allocation7 + $0x264] sm:$0xf0]  ;;  %v3342_v44 = vor.u32 %v4266_v34, %v3341_v33 }
  0x4a   :  { %1071 = vmatpush.bf16.msra.mxu2 %v3046_v6  ;;  %v3269_v45 = vld [vmem:[#allocation7 + $0x2e0] sm:$0xf]  ;;  %v4248_v46 = vld [vmem:[#allocation7 + $0x2e4] sm:$0xf0]  ;;  %v3406_v48 = vor.u32 %v4282_v38, %v3405_v37  ;;  %v2869_v52 = vld [vmem:[#allocation2] sm:$0xf]  ;;  %v3206_v55 = vor.u32 %v4232_v42, %v3205_v41 }
  0x4b   :  { %1085 = vmatpush.bf16.msra.mxu3 %v3110_v10  ;;  %v3333_v47 = vld [vmem:[#allocation7 + $0x360] sm:$0xf]  ;;  %v4264_v49 = vld [vmem:[#allocation7 + $0x364] sm:$0xf0]  ;;  %v4151_v53 = vld [vmem:[#allocation2 + $0x1c] sm:$0xf0]  ;;  %v3270_v60 = vor.u32 %v4248_v46, %v3269_v45 }
  0x4c   :  { %1044 = vmatpush.bf16.msra.mxu0 %v2910_v16  ;;  %v3397_v50 = vld [vmem:[#allocation7 + $0x3e0] sm:$0xf]  ;;  %v4280_v51 = vld [vmem:[#allocation7 + $0x3e4] sm:$0xf0]  ;;  %v2877_v54 = vld [vmem:[#allocation2 + $0x8] sm:$0xf]  ;;  %v4982_v58 = vor.u32 %v4151_v53, %v2869_v52  ;;  %v3334_v61 = vor.u32 %v4264_v49, %v3333_v47 }
  0x4d   :  { %1058 = vmatpush.bf16.msra.mxu1 %v2974_v19  ;;  %v3197_v56 = vld [vmem:[#allocation7 + $0x250] sm:$0xf]  ;;  %v4230_v57 = vld [vmem:[#allocation7 + $0x254] sm:$0xf0]  ;;  %v3398_v2 = vor.u32 %v4280_v51, %v3397_v50  ;;  %v4147_v6 = vld [vmem:[#allocation2 + $0x4] sm:$0xf] }
  0x4e   :  { %1072 = vmatpush.bf16.msra.mxu2 %v3038_v20  ;;  %v4152_v59 = vld [vmem:[#allocation2 + $0x24] sm:$0xf0]  ;;  %v3261_v62 = vld [vmem:[#allocation7 + $0x2d0] sm:$0xf]  ;;  %v2871_v7 = vld [vmem:[#allocation2 + $0x20] sm:$0xf0]  ;;  %v3198_v9 = vor.u32 %v4230_v57, %v3197_v56 }
  0x4f   :  { %1086 = vmatpush.bf16.msra.mxu3 %v3102_v24  ;;  %v4246_v63 = vld [vmem:[#allocation7 + $0x2d4] sm:$0xf0]  ;;  %v3325_v0 = vld [vmem:[#allocation7 + $0x350] sm:$0xf]  ;;  %v4984_v1 = vor.u32 %v4152_v59, %v2877_v54  ;;  %v4148_v8 = vld [vmem:[#allocation2 + $0xc] sm:$0xf]  ;;  %v4988_v10 = vor.u32 %v4147_v6, %v2871_v7 }
  0x50   :  { %1045 = vmatpush.bf16.msra.mxu0 %v2902_v31  ;;  %v4262_v3 = vld [vmem:[#allocation7 + $0x354] sm:$0xf0]  ;;  %v3389_v4 = vld [vmem:[#allocation7 + $0x3d0] sm:$0xf]  ;;  %v2879_v11 = vld [vmem:[#allocation2 + $0x28] sm:$0xf0]  ;;  %v3262_v12 = vor.u32 %v4246_v63, %v3261_v62 }
  0x51   :  { %1059 = vmatpush.bf16.msra.mxu1 %v2966_v35  ;;  %v4278_v5 = vld [vmem:[#allocation7 + $0x3d4] sm:$0xf0]  ;;  %v3326_v13 = vor.u32 %v4262_v3, %v3325_v0  ;;  %v3189_v14 = vld [vmem:[#allocation7 + $0x240] sm:$0xf]  ;;  %v4228_v15 = vld [vmem:[#allocation7 + $0x244] sm:$0xf0]  ;;  %v4990_v17 = vor.u32 %v4148_v8, %v2879_v11 }
  0x52   :  { %1073 = vmatpush.bf16.msra.mxu2 %v3030_v36  ;;  %v3253_v16 = vld [vmem:[#allocation7 + $0x2c0] sm:$0xf]  ;;  %v3390_v18 = vor.u32 %v4278_v5, %v3389_v4  ;;  %v4244_v19 = vld [vmem:[#allocation7 + $0x2c4] sm:$0xf0]  ;;  %v3190_v24 = vor.u32 %v4228_v15, %v3189_v14  ;;  %v3181_v27 = vld [vmem:[#allocation7 + $0x230] sm:$0xf] }
  0x53   :  { %1087 = vmatpush.bf16.msra.mxu3 %v3094_v39  ;;  %1046 = vmatmul.bf16.vlgmr.msra.gmra.mxu0 %v4982_v58  ;;  %v3317_v20 = vld [vmem:[#allocation7 + $0x340] sm:$0xf]  ;;  %v4260_v21 = vld [vmem:[#allocation7 + $0x344] sm:$0xf0]  ;;  %v3254_v25 = vor.u32 %v4244_v19, %v3253_v16  ;;  %v4226_v28 = vld [vmem:[#allocation7 + $0x234] sm:$0xf0] }
  0x54   :  { %1094 = vmatpush.bf16.msrb.mxu0 %v3214_v40  ;;  %1060 = vmatmul.bf16.vlgmr.msra.gmra.mxu1 %v4988_v10  ;;  %v3381_v22 = vld [vmem:[#allocation7 + $0x3c0] sm:$0xf]  ;;  %v4276_v23 = vld [vmem:[#allocation7 + $0x3c4] sm:$0xf0]  ;;  %v3318_v26 = vor.u32 %v4260_v21, %v3317_v20  ;;  %v3245_v29 = vld [vmem:[#allocation7 + $0x2b0] sm:$0xf]  ;;  %v3182_v36 = vor.u32 %v4226_v28, %v3181_v27 }
  0x55   :  { %1108 = vmatpush.bf16.msrb.mxu1 %v3278_v43  ;;  %1074 = vmatmul.bf16.vlgmr.msra.gmra.mxu2 %v4984_v1  ;;  %v3382_v30 = vor.u32 %v4276_v23, %v3381_v22  ;;  %v4242_v31 = vld [vmem:[#allocation7 + $0x2b4] sm:$0xf0]  ;;  %v3309_v32 = vld [vmem:[#allocation7 + $0x330] sm:$0xf]  ;;  %v3173_v39 = vld [vmem:[#allocation7 + $0x220] sm:$0xf] }
  0x56   :  { %1122 = vmatpush.bf16.msrb.mxu2 %v3342_v44  ;;  %1088 = vmatmul.bf16.vlgmr.msra.gmra.mxu3 %v4990_v17  ;;  %v4258_v33 = vld [vmem:[#allocation7 + $0x334] sm:$0xf0]  ;;  %v3373_v34 = vld [vmem:[#allocation7 + $0x3b0] sm:$0xf]  ;;  %v3246_v37 = vor.u32 %v4242_v31, %v3245_v29  ;;  %v4224_v40 = vld [vmem:[#allocation7 + $0x224] sm:$0xf0] }
  0x57   :  { %1136 = vmatpush.bf16.msrb.mxu3 %v3406_v48  ;;  %v4274_v35 = vld [vmem:[#allocation7 + $0x3b4] sm:$0xf0]  ;;  %v3310_v38 = vor.u32 %v4258_v33, %v3309_v32  ;;  %v3237_v41 = vld [vmem:[#allocation7 + $0x2a0] sm:$0xf]  ;;  %v4240_v43 = vld [vmem:[#allocation7 + $0x2a4] sm:$0xf0]  ;;  %v3174_v48 = vor.u32 %v4224_v40, %v3173_v39 }
  0x58   :  { %1095 = vmatpush.bf16.msrb.mxu0 %v3206_v55  ;;  %v3374_v42 = vor.u32 %v4274_v35, %v3373_v34  ;;  %v3301_v44 = vld [vmem:[#allocation7 + $0x320] sm:$0xf]  ;;  %v4256_v45 = vld [vmem:[#allocation7 + $0x324] sm:$0xf0]  ;;  %v3165_v49 = vld [vmem:[#allocation7 + $0x210] sm:$0xf]  ;;  %v3238_v50 = vor.u32 %v4240_v43, %v3237_v41 }
  0x59   :  { %1109 = vmatpush.bf16.msrb.mxu1 %v3270_v60  ;;  %v3365_v46 = vld [vmem:[#allocation7 + $0x3a0] sm:$0xf]  ;;  %v4272_v47 = vld [vmem:[#allocation7 + $0x3a4] sm:$0xf0]  ;;  %v3302_v51 = vor.u32 %v4256_v45, %v3301_v44  ;;  %v4222_v52 = vld [vmem:[#allocation7 + $0x214] sm:$0xf0] }
  0x5a   :  { %1123 = vmatpush.bf16.msrb.mxu2 %v3334_v61  ;;  %v3229_v53 = vld [vmem:[#allocation7 + $0x290] sm:$0xf]  ;;  %v4238_v54 = vld [vmem:[#allocation7 + $0x294] sm:$0xf0]  ;;  %v3366_v55 = vor.u32 %v4272_v47, %v3365_v46  ;;  %v3157_v61 = vld [vmem:[#allocation7 + $0x200] sm:$0xf]  ;;  %v3166_v63 = vor.u32 %v4222_v52, %v3165_v49 }
  0x5b   :  { %1137 = vmatpush.bf16.msrb.mxu3 %v3398_v2  ;;  %v3293_v56 = vld [vmem:[#allocation7 + $0x310] sm:$0xf]  ;;  %v4254_v57 = vld [vmem:[#allocation7 + $0x314] sm:$0xf0]  ;;  %v4220_v62 = vld [vmem:[#allocation7 + $0x204] sm:$0xf0]  ;;  %v3230_v5 = vor.u32 %v4238_v54, %v3229_v53 }
  0x5c   :  { %1096 = vmatpush.bf16.msrb.mxu0 %v3198_v9  ;;  %v3357_v59 = vld [vmem:[#allocation7 + $0x390] sm:$0xf]  ;;  %v4270_v60 = vld [vmem:[#allocation7 + $0x394] sm:$0xf0]  ;;  %v3221_v0 = vld [vmem:[#allocation7 + $0x280] sm:$0xf]  ;;  %v3294_v6 = vor.u32 %v4254_v57, %v3293_v56  ;;  %v3158_v19 = vor.u32 %v4220_v62, %v3157_v61 }
  0x5d   :  { %1110 = vmatpush.bf16.msrb.mxu1 %v3262_v12  ;;  %v4236_v2 = vld [vmem:[#allocation7 + $0x284] sm:$0xf0]  ;;  %v3285_v3 = vld [vmem:[#allocation7 + $0x300] sm:$0xf]  ;;  %v4169_v9 = vld [vmem:[#allocation7 + $0x74] sm:$0xf]  ;;  %v3358_v11 = vor.u32 %v4270_v60, %v3357_v59 }
  0x5e   :  { %1124 = vmatpush.bf16.msrb.mxu2 %v3326_v13  ;;  %v4252_v4 = vld [vmem:[#allocation7 + $0x304] sm:$0xf0]  ;;  %v3349_v7 = vld [vmem:[#allocation7 + $0x380] sm:$0xf]  ;;  %v2959_v12 = vld [vmem:[#allocation7 + $0x78] sm:$0xf0]  ;;  %v3222_v23 = vor.u32 %v4236_v2, %v3221_v0 }
  0x5f   :  { %1138 = vmatpush.bf16.msrb.mxu3 %v3390_v18  ;;  %v4268_v8 = vld [vmem:[#allocation7 + $0x384] sm:$0xf0]  ;;  %v4185_v13 = vld [vmem:[#allocation7 + $0xf4] sm:$0xf]  ;;  %v3023_v14 = vld [vmem:[#allocation7 + $0xf8] sm:$0xf0]  ;;  %v2962_v29 = vor.u32 %v4169_v9, %v2959_v12 }
  0x60   :  { %1097 = vmatpush.bf16.msrb.mxu0 %v3190_v24  ;;  %v4201_v15 = vld [vmem:[#allocation7 + $0x174] sm:$0xf]  ;;  %v3087_v16 = vld [vmem:[#allocation7 + $0x178] sm:$0xf0]  ;;  %v2885_v21 = vld [vmem:[#allocation2 + $0x10] sm:$0xf]  ;;  %v3286_v24 = vor.u32 %v4252_v4, %v3285_v3  ;;  %v3350_v28 = vor.u32 %v4268_v8, %v3349_v7  ;;  %v3026_v33 = vor.u32 %v4185_v13, %v3023_v14 }
  0x61   :  { %1111 = vmatpush.bf16.msrb.mxu1 %v3254_v25  ;;  %v4217_v18 = vld [vmem:[#allocation7 + $0x1f4] sm:$0xf]  ;;  %v3151_v20 = vld [vmem:[#allocation7 + $0x1f8] sm:$0xf0]  ;;  %v4153_v22 = vld [vmem:[#allocation2 + $0x2c] sm:$0xf0]  ;;  %v3090_v34 = vor.u32 %v4201_v15, %v3087_v16 }
  0x62   :  { %1125 = vmatpush.bf16.msrb.mxu2 %v3318_v26  ;;  %v2893_v25 = vld [vmem:[#allocation2 + $0x18] sm:$0xf]  ;;  %v4149_v27 = vld [vmem:[#allocation2 + $0x14] sm:$0xf]  ;;  %v4150_v31 = vld [vmem:[#allocation2 + $0x1c] sm:$0xf]  ;;  %v4994_v39 = vor.u32 %v4153_v22, %v2885_v21 }
  0x63   :  { %1139 = vmatpush.bf16.msrb.mxu3 %v3382_v30  ;;  %v4154_v26 = vld [vmem:[#allocation2 + $0x34] sm:$0xf0]  ;;  %v2887_v30 = vld [vmem:[#allocation2 + $0x30] sm:$0xf0]  ;;  %v2895_v32 = vld [vmem:[#allocation2 + $0x38] sm:$0xf0] }
  0x64   :  { %1098 = vmatpush.bf16.msrb.mxu0 %v3182_v36  ;;  %v4167_v35 = vld [vmem:[#allocation7 + $0x64] sm:$0xf]  ;;  %v2951_v36 = vld [vmem:[#allocation7 + $0x68] sm:$0xf0]  ;;  %v4996_v43 = vor.u32 %v4154_v26, %v2893_v25  ;;  %v4998_v44 = vor.u32 %v4149_v27, %v2887_v30  ;;  %v5000_v47 = vor.u32 %v4150_v31, %v2895_v32  ;;  %v2943_v52 = vld [vmem:[#allocation7 + $0x58] sm:$0xf0] }
  0x65   :  { %1112 = vmatpush.bf16.msrb.mxu1 %v3246_v37  ;;  %v4183_v37 = vld [vmem:[#allocation7 + $0xe4] sm:$0xf]  ;;  %v3015_v40 = vld [vmem:[#allocation7 + $0xe8] sm:$0xf0]  ;;  %v4181_v53 = vld [vmem:[#allocation7 + $0xd4] sm:$0xf] }
  0x66   :  { %1126 = vmatpush.bf16.msrb.mxu2 %v3310_v38  ;;  %v3154_v38 = vor.u32 %v4217_v18, %v3151_v20  ;;  %v4199_v41 = vld [vmem:[#allocation7 + $0x164] sm:$0xf]  ;;  %v3143_v46 = vld [vmem:[#allocation7 + $0x1e8] sm:$0xf0]  ;;  %v3018_v49 = vor.u32 %v4183_v37, %v3015_v40  ;;  %v4197_v56 = vld [vmem:[#allocation7 + $0x154] sm:$0xf] }
  0x67   :  { %1140 = vmatpush.bf16.msrb.mxu3 %v3374_v42  ;;  %v3079_v42 = vld [vmem:[#allocation7 + $0x168] sm:$0xf0]  ;;  %v4215_v45 = vld [vmem:[#allocation7 + $0x1e4] sm:$0xf]  ;;  %v3071_v57 = vld [vmem:[#allocation7 + $0x158] sm:$0xf0] }
  0x68   :  { %1099 = vmatpush.bf16.msrb.mxu0 %v3174_v48  ;;  %v2954_v48 = vor.u32 %v4167_v35, %v2951_v36  ;;  %v3146_v54 = vor.u32 %v4215_v45, %v3143_v46  ;;  %v4213_v59 = vld [vmem:[#allocation7 + $0x1d4] sm:$0xf]  ;;  %v3135_v60 = vld [vmem:[#allocation7 + $0x1d8] sm:$0xf0]  ;;  %v4163_v0 = vld [vmem:[#allocation7 + $0x44] sm:$0xf] }
  0x69   :  { %1113 = vmatpush.bf16.msrb.mxu1 %v3238_v50  ;;  %v3082_v50 = vor.u32 %v4199_v41, %v3079_v42  ;;  %v2935_v2 = vld [vmem:[#allocation7 + $0x48] sm:$0xf0]  ;;  %v4179_v3 = vld [vmem:[#allocation7 + $0xc4] sm:$0xf]  ;;  %v3138_v4 = vor.u32 %v4213_v59, %v3135_v60  ;;  %v4161_v14 = vld [vmem:[#allocation7 + $0x34] sm:$0xf] }
  0x6a   :  { %1127 = vmatpush.bf16.msrb.mxu2 %v3302_v51  ;;  %v4165_v51 = vld [vmem:[#allocation7 + $0x54] sm:$0xf]  ;;  %v3063_v7 = vld [vmem:[#allocation7 + $0x148] sm:$0xf0]  ;;  %v4211_v8 = vld [vmem:[#allocation7 + $0x1c4] sm:$0xf] }
  0x6b   :  { %1141 = vmatpush.bf16.msrb.mxu3 %v3366_v55  ;;  %v3007_v55 = vld [vmem:[#allocation7 + $0xd8] sm:$0xf0]  ;;  %v2946_v61 = vor.u32 %v4165_v51, %v2943_v52  ;;  %v3127_v9 = vld [vmem:[#allocation7 + $0x1c8] sm:$0xf0]  ;;  %v4177_v16 = vld [vmem:[#allocation7 + $0xb4] sm:$0xf] }
  0x6c   :  { %1100 = vmatpush.bf16.msrb.mxu0 %v3166_v63  ;;  %v3010_v62 = vor.u32 %v4181_v53, %v3007_v55  ;;  %v3074_v63 = vor.u32 %v4197_v56, %v3071_v57  ;;  %v2927_v15 = vld [vmem:[#allocation7 + $0x38] sm:$0xf0]  ;;  %v3130_v18 = vor.u32 %v4211_v8, %v3127_v9  ;;  %v4193_v20 = vld [vmem:[#allocation7 + $0x134] sm:$0xf]  ;;  %v4159_v27 = vld [vmem:[#allocation7 + $0x24] sm:$0xf] }
  0x6d   :  { %1114 = vmatpush.bf16.msrb.mxu1 %v3230_v5  ;;  %v2999_v5 = vld [vmem:[#allocation7 + $0xc8] sm:$0xf0]  ;;  %v3055_v21 = vld [vmem:[#allocation7 + $0x138] sm:$0xf0]  ;;  %v4209_v22 = vld [vmem:[#allocation7 + $0x1b4] sm:$0xf] }
  0x6e   :  { %1128 = vmatpush.bf16.msrb.mxu2 %v3294_v6  ;;  %v4195_v6 = vld [vmem:[#allocation7 + $0x144] sm:$0xf]  ;;  %v3002_v12 = vor.u32 %v4179_v3, %v2999_v5  ;;  %v3058_v26 = vor.u32 %v4193_v20, %v3055_v21  ;;  %v2983_v31 = vld [vmem:[#allocation7 + $0xa8] sm:$0xf0]  ;;  %v4157_v40 = vld [vmem:[#allocation7 + $0x14] sm:$0xf] }
  0x6f   :  { %1142 = vmatpush.bf16.msrb.mxu3 %v3358_v11  ;;  %v2938_v11 = vor.u32 %v4163_v0, %v2935_v2  ;;  %v3066_v13 = vor.u32 %v4195_v6, %v3063_v7  ;;  %v4191_v32 = vld [vmem:[#allocation7 + $0x124] sm:$0xf]  ;;  %v3111_v35 = vld [vmem:[#allocation7 + $0x1a8] sm:$0xf0]  ;;  %v2911_v41 = vld [vmem:[#allocation7 + $0x18] sm:$0xf0] }
  0x70   :  { %1101 = vmatpush.bf16.msrb.mxu0 %v3158_v19  ;;  %v2991_v19 = vld [vmem:[#allocation7 + $0xb8] sm:$0xf0]  ;;  %v4173_v42 = vld [vmem:[#allocation7 + $0x94] sm:$0xf]  ;;  %v2914_v52 = vor.u32 %v4157_v40, %v2911_v41  ;;  %v4155_v53 = vld [vmem:[#allocation7 + $0x4] sm:$0xf] }
  0x71   :  { %1115 = vmatpush.bf16.msrb.mxu1 %v3222_v23  ;;  %v3119_v23 = vld [vmem:[#allocation7 + $0x1b8] sm:$0xf0]  ;;  %v2994_v25 = vor.u32 %v4177_v16, %v2991_v19  ;;  %v4171_v57 = vld [vmem:[#allocation7 + $0x84] sm:$0xf]  ;;  %v2967_v59 = vld [vmem:[#allocation7 + $0x88] sm:$0xf0] }
  0x72   :  { %1129 = vmatpush.bf16.msrb.mxu2 %v3286_v24  ;;  %v2930_v24 = vor.u32 %v4161_v14, %v2927_v15  ;;  %v3122_v30 = vor.u32 %v4209_v22, %v3119_v23  ;;  %v2975_v46 = vld [vmem:[#allocation7 + $0x98] sm:$0xf0]  ;;  %v4187_v60 = vld [vmem:[#allocation7 + $0x104] sm:$0xf]  ;;  %v3095_v0 = vld [vmem:[#allocation7 + $0x188] sm:$0xf0]  ;;  %v2970_v9 = vor.u32 %v4171_v57, %v2967_v59 }
  0x73   :  { %1143 = vmatpush.bf16.msrb.mxu3 %v3350_v28  ;;  %1102 = vmatmul.bf16.vlgmr.msrb.gmra.mxu0 %v4994_v39  ;;  %v2919_v28 = vld [vmem:[#allocation7 + $0x28] sm:$0xf0]  ;;  %v3103_v51 = vld [vmem:[#allocation7 + $0x198] sm:$0xf0]  ;;  %v2978_v55 = vor.u32 %v4173_v42, %v2975_v46  ;;  %v4233_v2 = vld [vmem:[#allocation7 + $0x274] sm:$0xf] }
  0x74   :  { %1150 = vmatpush.bf16.msra.mxu0 %v2962_v29  ;;  %1116 = vmatmul.bf16.vlgmr.msrb.gmra.mxu1 %v4998_v44  ;;  %v4175_v29 = vld [vmem:[#allocation7 + $0xa4] sm:$0xf]  ;;  %v2922_v36 = vor.u32 %v4159_v27, %v2919_v28  ;;  %v3215_v3 = vld [vmem:[#allocation7 + $0x278] sm:$0xf0]  ;;  %v4265_v7 = vld [vmem:[#allocation7 + $0x374] sm:$0xf] }
  0x75   :  { %1164 = vmatpush.bf16.msra.mxu1 %v3026_v33  ;;  %1130 = vmatmul.bf16.vlgmr.msrb.gmra.mxu2 %v4996_v43  ;;  %v3047_v33 = vld [vmem:[#allocation7 + $0x128] sm:$0xf0]  ;;  %v2986_v37 = vor.u32 %v4175_v29, %v2983_v31  ;;  %v3279_v6 = vld [vmem:[#allocation7 + $0x2f8] sm:$0xf0]  ;;  %v3218_v15 = vor.u32 %v4233_v2, %v3215_v3  ;;  %v4231_v16 = vld [vmem:[#allocation7 + $0x264] sm:$0xf] }
  0x76   :  { %1178 = vmatpush.bf16.msra.mxu2 %v3090_v34  ;;  %1144 = vmatmul.bf16.vlgmr.msrb.gmra.mxu3 %v5000_v47  ;;  %v4207_v34 = vld [vmem:[#allocation7 + $0x1a4] sm:$0xf]  ;;  %v3343_v8 = vld [vmem:[#allocation7 + $0x378] sm:$0xf0]  ;;  %v3271_v22 = vld [vmem:[#allocation7 + $0x2e8] sm:$0xf0] }
  0x77   :  { %1192 = vmatpush.bf16.msra.mxu3 %v3154_v38  ;;  %v3050_v38 = vor.u32 %v4191_v32, %v3047_v33  ;;  %v3114_v45 = vor.u32 %v4207_v34, %v3111_v35  ;;  %v3346_v20 = vor.u32 %v4265_v7, %v3343_v8  ;;  %v4247_v21 = vld [vmem:[#allocation7 + $0x2e4] sm:$0xf]  ;;  %v3399_v27 = vld [vmem:[#allocation7 + $0x3e8] sm:$0xf0]  ;;  %v4229_v31 = vld [vmem:[#allocation7 + $0x254] sm:$0xf] }
  0x78   :  { %1151 = vmatpush.bf16.msra.mxu0 %v2954_v48  ;;  %v4189_v48 = vld [vmem:[#allocation7 + $0x114] sm:$0xf]  ;;  %v3274_v29 = vor.u32 %v4247_v21, %v3271_v22  ;;  %v3199_v32 = vld [vmem:[#allocation7 + $0x258] sm:$0xf0]  ;;  %v4227_v46 = vld [vmem:[#allocation7 + $0x244] sm:$0xf] }
  0x79   :  { %1165 = vmatpush.bf16.msra.mxu1 %v3018_v49  ;;  %v3039_v49 = vld [vmem:[#allocation7 + $0x118] sm:$0xf0]  ;;  %v4245_v33 = vld [vmem:[#allocation7 + $0x2d4] sm:$0xf]  ;;  %v3202_v41 = vor.u32 %v4229_v31, %v3199_v32  ;;  %v4239_v7 = vld [vmem:[#allocation7 + $0x2a4] sm:$0xf] }
  0x7a   :  { %1179 = vmatpush.bf16.msra.mxu2 %v3082_v50  ;;  %v4205_v50 = vld [vmem:[#allocation7 + $0x194] sm:$0xf]  ;;  %v3042_v56 = vor.u32 %v4189_v48, %v3039_v49  ;;  %v3263_v35 = vld [vmem:[#allocation7 + $0x2d8] sm:$0xf0]  ;;  %v3191_v48 = vld [vmem:[#allocation7 + $0x248] sm:$0xf0] }
  0x7b   :  { %1193 = vmatpush.bf16.msra.mxu3 %v3146_v54  ;;  %v2903_v54 = vld [vmem:[#allocation7 + $0x8] sm:$0xf0]  ;;  %v3391_v40 = vld [vmem:[#allocation7 + $0x3d8] sm:$0xf0]  ;;  %v3266_v42 = vor.u32 %v4245_v33, %v3263_v35  ;;  %v4241_v57 = vld [vmem:[#allocation7 + $0x2b4] sm:$0xf] }
  0x7c   :  { %1152 = vmatpush.bf16.msra.mxu0 %v2946_v61  ;;  %v3106_v61 = vor.u32 %v4205_v50, %v3103_v51  ;;  %v2906_v5 = vor.u32 %v4155_v53, %v2903_v54  ;;  %v3255_v50 = vld [vmem:[#allocation7 + $0x2c8] sm:$0xf0]  ;;  %v4259_v51 = vld [vmem:[#allocation7 + $0x344] sm:$0xf]  ;;  %v4237_v21 = vld [vmem:[#allocation7 + $0x294] sm:$0xf] }
  0x7d   :  { %1166 = vmatpush.bf16.msra.mxu1 %v3010_v62  ;;  %v3031_v62 = vld [vmem:[#allocation7 + $0x108] sm:$0xf0]  ;;  %v4275_v53 = vld [vmem:[#allocation7 + $0x3c4] sm:$0xf]  ;;  %s2844_s28 = sshll.u32 %s5079_s15, 4  ;;  %s4841_s29 = smov 256   ;;  %s2845_s28 = int_to_ptr.hbm [resolvable:$true] %s2844_s28 }
  0x7e   :  { %1180 = vmatpush.bf16.msra.mxu2 %v3074_v63  ;;  %v4203_v63 = vld [vmem:[#allocation7 + $0x184] sm:$0xf]  ;;  %v3159_v32 = vld [vmem:[#allocation7 + $0x208] sm:$0xf0]  ;;  %s4842_s6 = smov 16   ;;  %s2831_s2 = sshll.u32 %s5078_s14, 4  ;;  %s2832_s2 = int_to_ptr.hbm [resolvable:$true] %s2831_s2 }
  0x7f   :  { %1194 = vmatpush.bf16.msra.mxu3 %v3138_v4  ;;  %v4249_v4 = vld [vmem:[#allocation7 + $0x2f4] sm:$0xf]  ;;  %v3098_v14 = vor.u32 %v4203_v63, %v3095_v0  ;;  %v3375_v0 = vld [vmem:[#allocation7 + $0x3b8] sm:$0xf0]  ;;  %v4219_v31 = vld [vmem:[#allocation7 + $0x204] sm:$0xf] }
  0x80   :  { %1153 = vmatpush.bf16.msra.mxu0 %v2938_v11  ;;  %v3034_v11 = vor.u32 %v4187_v60, %v3031_v62  ;;  %v3282_v19 = vor.u32 %v4249_v4, %v3279_v6  ;;  %v3247_v60 = vld [vmem:[#allocation7 + $0x2b8] sm:$0xf0]  ;;  %v4273_v63 = vld [vmem:[#allocation7 + $0x3b4] sm:$0xf]  ;;  %v3175_v6 = vld [vmem:[#allocation7 + $0x228] sm:$0xf0] }
  0x81   :  { %1167 = vmatpush.bf16.msra.mxu1 %v3002_v12  ;;  %v4281_v12 = vld [vmem:[#allocation7 + $0x3f4] sm:$0xf]  ;;  %v3311_v62 = vld [vmem:[#allocation7 + $0x338] sm:$0xf0]  ;;  %v3250_v3 = vor.u32 %v4241_v57, %v3247_v60  ;;  %v3378_v8 = vor.u32 %v4273_v63, %v3375_v0  ;;  %v4235_v33 = vld [vmem:[#allocation7 + $0x284] sm:$0xf] }
  0x82   :  { %1181 = vmatpush.bf16.msra.mxu2 %v3066_v13  ;;  %v3407_v13 = vld [vmem:[#allocation7 + $0x3f8] sm:$0xf0]  ;;  %v3223_v35 = vld [vmem:[#allocation7 + $0x288] sm:$0xf0]  ;;  %s4844_s4 = smov 1024  }
  0x83   :  { %1195 = vmatpush.bf16.msra.mxu3 %v3130_v18  ;;  %v3207_v18 = vld [vmem:[#allocation7 + $0x268] sm:$0xf0]  ;;  %v3410_v23 = vor.u32 %v4281_v12, %v3407_v13  ;;  %v4271_v13 = vld [vmem:[#allocation7 + $0x3a4] sm:$0xf] }
  0x84   :  { %1154 = vmatpush.bf16.msra.mxu0 %v2930_v24  ;;  %v4263_v24 = vld [vmem:[#allocation7 + $0x364] sm:$0xf]  ;;  %v3210_v28 = vor.u32 %v4231_v16, %v3207_v18  ;;  %v3303_v12 = vld [vmem:[#allocation7 + $0x328] sm:$0xf0] }
  0x85   :  { %1168 = vmatpush.bf16.msra.mxu1 %v2994_v25  ;;  %v3335_v25 = vld [vmem:[#allocation7 + $0x368] sm:$0xf0] }
  0x86   :  { %1182 = vmatpush.bf16.msra.mxu2 %v3058_v26  ;;  %v4279_v26 = vld [vmem:[#allocation7 + $0x3e4] sm:$0xf] }
  0x87   :  { %1196 = vmatpush.bf16.msra.mxu3 %v3122_v30  ;;  %v3338_v30 = vor.u32 %v4263_v24, %v3335_v25  ;;  %v3402_v34 = vor.u32 %v4279_v26, %v3399_v27  ;;  %v4253_v24 = vld [vmem:[#allocation7 + $0x314] sm:$0xf]  ;;  %v3295_v25 = vld [vmem:[#allocation7 + $0x318] sm:$0xf0] }
  0x88   :  { %1155 = vmatpush.bf16.msra.mxu0 %v2922_v36  ;;  %v4261_v36 = vld [vmem:[#allocation7 + $0x354] sm:$0xf]  ;;  %v3359_v27 = vld [vmem:[#allocation7 + $0x398] sm:$0xf0] }
  0x89   :  { %1169 = vmatpush.bf16.msra.mxu1 %v2986_v37  ;;  %v3327_v37 = vld [vmem:[#allocation7 + $0x358] sm:$0xf0]  ;;  %v4269_v26 = vld [vmem:[#allocation7 + $0x394] sm:$0xf] }
  0x8a   :  { %1183 = vmatpush.bf16.msra.mxu2 %v3050_v38  ;;  %v4277_v38 = vld [vmem:[#allocation7 + $0x3d4] sm:$0xf] }
  0x8b   :  { %1197 = vmatpush.bf16.msra.mxu3 %v3114_v45  ;;  %v3330_v45 = vor.u32 %v4261_v36, %v3327_v37  ;;  %v3394_v49 = vor.u32 %v4277_v38, %v3391_v40  ;;  %v4251_v36 = vld [vmem:[#allocation7 + $0x304] sm:$0xf]  ;;  %v3287_v37 = vld [vmem:[#allocation7 + $0x308] sm:$0xf0] }
  0x8c   :  { %1156 = vmatpush.bf16.msra.mxu0 %v2914_v52  ;;  %v3319_v52 = vld [vmem:[#allocation7 + $0x348] sm:$0xf0]  ;;  %v4267_v38 = vld [vmem:[#allocation7 + $0x384] sm:$0xf] }
  0x8d   :  { %1170 = vmatpush.bf16.msra.mxu1 %v2978_v55  ;;  %v4225_v55 = vld [vmem:[#allocation7 + $0x234] sm:$0xf]  ;;  %v3351_v40 = vld [vmem:[#allocation7 + $0x388] sm:$0xf0] }
  0x8e   :  { %1184 = vmatpush.bf16.msra.mxu2 %v3042_v56  ;;  %v3183_v56 = vld [vmem:[#allocation7 + $0x238] sm:$0xf0] }
  0x8f   :  { %1198 = vmatpush.bf16.msra.mxu3 %v3106_v61  ;;  %v4257_v61 = vld [vmem:[#allocation7 + $0x334] sm:$0xf]  ;;  %v3186_v2 = vor.u32 %v4225_v55, %v3183_v56 }
  0x90   :  { %1157 = vmatpush.bf16.msra.mxu0 %v2906_v5  ;;  %v3314_v4 = vor.u32 %v4257_v61, %v3311_v62  ;;  %v4223_v5 = vld [vmem:[#allocation7 + $0x224] sm:$0xf] }
  0x91   :  { %1171 = vmatpush.bf16.msra.mxu1 %v2970_v9  ;;  %v3239_v9 = vld [vmem:[#allocation7 + $0x2a8] sm:$0xf0] }
  0x92   :  { %1185 = vmatpush.bf16.msra.mxu2 %v3034_v11  ;;  %v4255_v11 = vld [vmem:[#allocation7 + $0x324] sm:$0xf]  ;;  %v3242_v16 = vor.u32 %v4239_v7, %v3239_v9 }
  0x93   :  { %1199 = vmatpush.bf16.msra.mxu3 %v3098_v14  ;;  %1158 = vmatmul.bf16.vlgmr.msra.gmra.mxu0 %v4982_v58  ;;  %v3383_v58 = vld [vmem:[#allocation7 + $0x3c8] sm:$0xf0]  ;;  %v3306_v18 = vor.u32 %v4255_v11, %v3303_v12 }
  0x94   :  { %1206 = vmatpush.bf16.msrb.mxu0 %v3218_v15  ;;  %1172 = vmatmul.bf16.vlgmr.msra.gmra.mxu1 %v4988_v10  ;;  %v3322_v10 = vor.u32 %v4259_v51, %v3319_v52  ;;  %v3386_v59 = vor.u32 %v4275_v53, %v3383_v58  ;;  %v3367_v14 = vld [vmem:[#allocation7 + $0x3a8] sm:$0xf0]  ;;  %v3178_v15 = vor.u32 %v4223_v5, %v3175_v6  ;;  %v4286_v51 = vld [vmem:[#allocation8 + $0x18] sm:$0xff]  ;;  %v4285_v53 = vld [vmem:[#allocation8 + $0x10] sm:$0xff] }
  0x95   :  { %1220 = vmatpush.bf16.msrb.mxu1 %v3282_v19  ;;  %1186 = vmatmul.bf16.vlgmr.msra.gmra.mxu2 %v4984_v1  ;;  %v4243_v1 = vld [vmem:[#allocation7 + $0x2c4] sm:$0xf]  ;;  %v4221_v19 = vld [vmem:[#allocation7 + $0x214] sm:$0xf]  ;;  %v3370_v22 = vor.u32 %v4271_v13, %v3367_v14 }
  0x96   :  { %1234 = vmatpush.bf16.msrb.mxu2 %v3346_v20  ;;  %1200 = vmatmul.bf16.vlgmr.msra.gmra.mxu3 %v4990_v17  ;;  %v3194_v17 = vor.u32 %v4227_v46, %v3191_v48  ;;  %v3258_v54 = vor.u32 %v4243_v1, %v3255_v50  ;;  %v3167_v20 = vld [vmem:[#allocation7 + $0x218] sm:$0xf0]  ;;  %v3354_v46 = vor.u32 %v4267_v38, %v3351_v40  ;;  %v4289_v1 = vld [vmem:[#allocation8 + $0x30] sm:$0xff]  ;;  %v4287_v50 = vld [vmem:[#allocation8 + $0x20] sm:$0xff] }
  0x97   :  { %1248 = vmatpush.bf16.msrb.mxu3 %v3410_v23  ;;  %v3231_v23 = vld [vmem:[#allocation7 + $0x298] sm:$0xf0] }
  0x98   :  { %1207 = vmatpush.bf16.msrb.mxu0 %v3210_v28  ;;  %v3170_v28 = vor.u32 %v4221_v19, %v3167_v20  ;;  %v4290_v48 = vld [vmem:[#allocation8 + $0x38] sm:$0xff] }
  0x99   :  { %1221 = vmatpush.bf16.msrb.mxu1 %v3274_v29  ;;  %v3234_v29 = vor.u32 %v4237_v21, %v3231_v23 }
  0x9a   :  { %1235 = vmatpush.bf16.msrb.mxu2 %v3338_v30  ;;  %v3298_v30 = vor.u32 %v4253_v24, %v3295_v25 }
  0x9b   :  { %1249 = vmatpush.bf16.msrb.mxu3 %v3402_v34  ;;  %v3362_v34 = vor.u32 %v4269_v26, %v3359_v27  ;;  %v4296_v27 = vld [vmem:[#allocation8 + $0x68] sm:$0xff] }
  0x9c   :  { %1208 = vmatpush.bf16.msrb.mxu0 %v3202_v41  ;;  %v3162_v41 = vor.u32 %v4219_v31, %v3159_v32  ;;  %v4292_v32 = vld [vmem:[#allocation8 + $0x48] sm:$0xff] }
  0x9d   :  { %1222 = vmatpush.bf16.msrb.mxu1 %v3266_v42  ;;  %v3226_v42 = vor.u32 %v4235_v33, %v3223_v35  ;;  %v4291_v35 = vld [vmem:[#allocation8 + $0x40] sm:$0xff] }
  0x9e   :  { %1236 = vmatpush.bf16.msrb.mxu2 %v3330_v45  ;;  %v3290_v45 = vor.u32 %v4251_v36, %v3287_v37 }
  0x9f   :  { %1250 = vmatpush.bf16.msrb.mxu3 %v3394_v49  ;;  %v4288_v49 = vld [vmem:[#allocation8 + $0x28] sm:$0xff] }
  0xa0   :  { %1209 = vmatpush.bf16.msrb.mxu0 %v3194_v17 }
  0xa1   :  { %1223 = vmatpush.bf16.msrb.mxu1 %v3258_v54 }
  0xa2   :  { %1237 = vmatpush.bf16.msrb.mxu2 %v3322_v10  ;;  %v4283_v10 = vld [vmem:[#allocation8] sm:$0xff] }
  0xa3   :  { %1251 = vmatpush.bf16.msrb.mxu3 %v3386_v59 }
  0xa4   :  { %1210 = vmatpush.bf16.msrb.mxu0 %v3186_v2 }
  0xa5   :  { %1224 = vmatpush.bf16.msrb.mxu1 %v3250_v3 }
  0xa6   :  { %1238 = vmatpush.bf16.msrb.mxu2 %v3314_v4 }
  0xa7   :  { %1252 = vmatpush.bf16.msrb.mxu3 %v3378_v8 }
  0xa8   :  { %1211 = vmatpush.bf16.msrb.mxu0 %v3178_v15 }
  0xa9   :  { %1225 = vmatpush.bf16.msrb.mxu1 %v3242_v16 }
  0xaa   :  { %1239 = vmatpush.bf16.msrb.mxu2 %v3306_v18  ;;  %v4298_v18 = vld [vmem:[#allocation8 + $0x78] sm:$0xff] }
  0xab   :  { %1253 = vmatpush.bf16.msrb.mxu3 %v3370_v22  ;;  %v4297_v22 = vld [vmem:[#allocation8 + $0x70] sm:$0xff] }
  0xac   :  { %1212 = vmatpush.bf16.msrb.mxu0 %v3170_v28  ;;  %v4295_v28 = vld [vmem:[#allocation8 + $0x60] sm:$0xff] }
  0xad   :  { %1226 = vmatpush.bf16.msrb.mxu1 %v3234_v29  ;;  %v4294_v29 = vld [vmem:[#allocation8 + $0x58] sm:$0xff] }
  0xae   :  { %1240 = vmatpush.bf16.msrb.mxu2 %v3298_v30  ;;  %v4293_v30 = vld [vmem:[#allocation8 + $0x50] sm:$0xff] }
  0xaf   :  { %1254 = vmatpush.bf16.msrb.mxu3 %v3362_v34 }
  0xb0   :  { %1213 = vmatpush.bf16.msrb.mxu0 %v3162_v41 }
  0xb1   :  { %1227 = vmatpush.bf16.msrb.mxu1 %v3226_v42 }
  0xb2   :  { %1241 = vmatpush.bf16.msrb.mxu2 %v3290_v45 }
  0xb3   :  { %1255 = vmatpush.bf16.msrb.mxu3 %v3354_v46  ;;  %1214 = vmatmul.bf16.vlgmr.msrb.gmra.mxu0 %v4994_v39  ;;  %v5017_v39 = vld [vmem:[%s5067_s3] sm:$0x3] }
  0xb4   :  { %1228 = vmatmul.bf16.vlgmr.msrb.gmra.mxu1 %v4998_v44  ;;  %1400 = vmatpush.bf16.msra.mxu0 %v4290_v48  ;;  %v354_v44 = vperm.slane %v5017_v39, 0  ;;  %v355_v34 = vperm.slane %v5017_v39, 1 }
  0xb5   :  { %1242 = vmatmul.bf16.vlgmr.msrb.gmra.mxu2 %v4996_v43  ;;  %1414 = vmatpush.bf16.msra.mxu1 %v4298_v18  ;;  %v4310_v18 = vld [vmem:[#allocation11 + $0x54] sm:$0xf0] }
  0xb6   :  { %1256 = vmatmul.bf16.vlgmr.msrb.gmra.mxu3 %v5000_v47  ;;  %v4284_v47 = vld [vmem:[#allocation8 + $0x8] sm:$0xff] }
  0xb8   :  { %1401 = vmatpush.bf16.msra.mxu0 %v4289_v1 }
  0xb9   :  { %1415 = vmatpush.bf16.msra.mxu1 %v4297_v22 }
  0xbc   :  { %1402 = vmatpush.bf16.msra.mxu0 %v4288_v49 }
  0xbd   :  { %1416 = vmatpush.bf16.msra.mxu1 %v4296_v27 }
  0xc0   :  { %1403 = vmatpush.bf16.msra.mxu0 %v4287_v50 }
  0xc1   :  { %1417 = vmatpush.bf16.msra.mxu1 %v4295_v28 }
  0xc4   :  { %1404 = vmatpush.bf16.msra.mxu0 %v4286_v51 }
  0xc5   :  { %1418 = vmatpush.bf16.msra.mxu1 %v4294_v29  ;;  %v3501_v29 = vld [vmem:[#allocation11 + $0x30] sm:$0xf] }
  0xc8   :  { %1405 = vmatpush.bf16.msra.mxu0 %v4285_v53 }
  0xc9   :  { %1419 = vmatpush.bf16.msra.mxu1 %v4293_v30  ;;  %v4306_v30 = vld [vmem:[#allocation11 + $0x34] sm:$0xf0] }
  0xcc   :  { %1406 = vmatpush.bf16.msra.mxu0 %v4284_v47 }
  0xcd   :  { %1420 = vmatpush.bf16.msra.mxu1 %v4292_v32  ;;  %v3502_v32 = vor.u32 %v4306_v30, %v3501_v29  ;;  %v4333_v30 = vld [vmem:[#allocation16 + $0x54] sm:$0xf] }
  0xd0   :  { %v1047_v52 = vpop.f32.mrf.mxu0  ;;  %1407 = vmatpush.bf16.msra.mxu0 %v4283_v10 }
  0xd1   :  { %v1061_v43 = vpop.f32.mrf.mxu1  ;;  %v1048_v17 = vadd.f32 %v1047_v52, %v354_v44  ;;  %1421 = vmatpush.bf16.msra.mxu1 %v4291_v35  ;;  %v3493_v35 = vld [vmem:[#allocation11 + $0x20] sm:$0xf] }
  0xd3   :  { %v1062_v57 = vadd.f32 %v1061_v43, %v1048_v17 }
  0xd8   :  { %v1075_v58 = vpop.f32.mrf.mxu2  ;;  %v1049_v55 = vpop.f32.mrf.mxu0 }
  0xd9   :  { %v1089_v54 = vpop.f32.mrf.mxu3  ;;  %v1063_v56 = vpop.f32.mrf.mxu1  ;;  %v1050_v59 = vadd.f32 %v1049_v55, %v354_v44  ;;  %v1076_v60 = vadd.f32 %v1075_v58, %v1062_v57 }
  0xdb   :  { %v1064_v62 = vadd.f32 %v1063_v56, %v1050_v59  ;;  %v1090_v0 = vadd.f32 %v1089_v54, %v1076_v60 }
  0xe0   :  { %v1077_v61 = vpop.f32.mrf.mxu2 }
  0xe1   :  { %v1091_v63 = vpop.f32.mrf.mxu3  ;;  %v1078_v4 = vadd.f32 %v1077_v61, %v1064_v62 }
  0xe3   :  { %v1092_v6 = vadd.f32 %v1091_v63, %v1078_v4  ;;  %v4314_v4 = vld [vmem:[#allocation11 + $0x74] sm:$0xf0] }
  0xf0   :  { %v1103_v2 = vpop.f32.mrf.mxu0 }
  0xf1   :  { %v1117_v3 = vpop.f32.mrf.mxu1  ;;  %v1104_v5 = vadd.f32 %v1103_v2, %v1090_v0 }
  0xf3   :  { %v1118_v8 = vadd.f32 %v1117_v3, %v1104_v5  ;;  %v3533_v3 = vld [vmem:[#allocation11 + $0x70] sm:$0xf]  ;;  %v4313_v5 = vld [vmem:[#allocation11 + $0x74] sm:$0xf] }
  0xf8   :  { %v1131_v7 = vpop.f32.mrf.mxu2  ;;  %v1105_v9 = vpop.f32.mrf.mxu0 }
  0xf9   :  { %v1145_v11 = vpop.f32.mrf.mxu3  ;;  %v1106_v12 = vadd.f32 %v1105_v9, %v1092_v6  ;;  %v1119_v13 = vpop.f32.mrf.mxu1  ;;  %v1132_v14 = vadd.f32 %v1131_v7, %v1118_v8  ;;  %v3534_v6 = vor.u32 %v4314_v4, %v3533_v3  ;;  %v3535_v7 = vld [vmem:[#allocation11 + $0x78] sm:$0xf0]  ;;  %v3525_v8 = vld [vmem:[#allocation11 + $0x60] sm:$0xf]  ;;  %v4312_v9 = vld [vmem:[#allocation11 + $0x64] sm:$0xf0] }
  0xfa   :  { %v4318_v3 = vld [vmem:[#allocation13 + $0x18] sm:$0xff]  ;;  %v4317_v4 = vld [vmem:[#allocation13 + $0x10] sm:$0xff] }
  0xfb   :  { %v1120_v15 = vadd.f32 %v1119_v13, %v1106_v12  ;;  %v1146_v19 = vadd.f32 %v1145_v11, %v1132_v14  ;;  %v3538_v11 = vor.u32 %v4313_v5, %v3535_v7  ;;  %v4311_v12 = vld [vmem:[#allocation11 + $0x64] sm:$0xf]  ;;  %v3527_v13 = vld [vmem:[#allocation11 + $0x68] sm:$0xf0]  ;;  %1533 = vmatpush.bf16.msra.mxu2 %v3534_v6  ;;  %v3526_v14 = vor.u32 %v4312_v9, %v3525_v8 }
  0xfc   :  { %v4316_v5 = vld [vmem:[#allocation13 + $0x8] sm:$0xff]  ;;  %v4315_v6 = vld [vmem:[#allocation13] sm:$0xff] }
  0xfd   :  { %v1262_v24 = vmax.f32 %v1146_v19, 0.0  ;;  %1547 = vmatpush.bf16.msra.mxu3 %v3538_v11  ;;  %v4309_v19 = vld [vmem:[#allocation11 + $0x54] sm:$0xf]  ;;  %v1447_v7 = vld [vmem:[%s5071_s7] sm:$0x3]  ;;  %s4840_s7 = smov [#allocation21]  }
  0xfe   :  { %v1449_v8 = vperm.slane %v1447_v7, 0  ;;  %v1450_v9 = vperm.slane %v1447_v7, 1  ;;  %v3629_v11 = vld [vmem:[#allocation16 + $0x70] sm:$0xf]  ;;  %v3583_v7 = vld [vmem:[#allocation16 + $0x18] sm:$0xf0] }
  0xff   :  { %1534 = vmatpush.bf16.msra.mxu2 %v3526_v14  ;;  %s2842_s30 = sshll.u32 %s4840_s7, 4  ;;  %s2843_s30 = int_to_ptr.vmem [resolvable:$true] %s2842_s30 }
 0x100   :  { %v1133_v16 = vpop.f32.mrf.mxu2 }
 0x101   :  { %v1134_v20 = vadd.f32 %v1133_v16, %v1120_v15  ;;  %v1147_v21 = vpop.f32.mrf.mxu3  ;;  %v3530_v15 = vor.u32 %v4311_v12, %v3527_v13  ;;  %v3517_v16 = vld [vmem:[#allocation11 + $0x50] sm:$0xf]  ;;  %v4338_v12 = vld [vmem:[#allocation16 + $0x74] sm:$0xf0]  ;;  %v4337_v13 = vld [vmem:[#allocation16 + $0x74] sm:$0xf] }
 0x102   :  { %v3630_v14 = vor.u32 %v4338_v12, %v3629_v11  ;;  %v4324_v11 = vld [vmem:[#allocation16 + $0x4] sm:$0xf0]  ;;  %v4323_v12 = vld [vmem:[#allocation16 + $0x4] sm:$0xf] }
 0x103   :  { %v1148_v23 = vadd.f32 %v1147_v21, %v1134_v20  ;;  %v3519_v20 = vld [vmem:[#allocation11 + $0x58] sm:$0xf0]  ;;  %v3518_v21 = vor.u32 %v4310_v18, %v3517_v16  ;;  %1548 = vmatpush.bf16.msra.mxu3 %v3530_v15  ;;  %v3621_v16 = vld [vmem:[#allocation16 + $0x60] sm:$0xf]  ;;  %v4336_v18 = vld [vmem:[#allocation16 + $0x64] sm:$0xf0] }
 0x104   :  { %v3522_v22 = vor.u32 %v4309_v19, %v3519_v20  ;;  %v3631_v15 = vld [vmem:[#allocation16 + $0x78] sm:$0xf0]  ;;  %v4335_v20 = vld [vmem:[#allocation16 + $0x64] sm:$0xf]  ;;  %1761 = vmatpush.bf16.msrb.mxu1 %v3630_v14  ;;  %v3575_v14 = vld [vmem:[#allocation16 + $0x8] sm:$0xf0] }
 0x105   :  { %v1264_v25 = vmax.f32 %v1148_v23, 0.0  ;;  %v3509_v23 = vld [vmem:[#allocation11 + $0x40] sm:$0xf]  ;;  %1535 = vmatpush.bf16.msra.mxu2 %v3518_v21  ;;  %v3634_v19 = vor.u32 %v4337_v13, %v3631_v15  ;;  %v3623_v21 = vld [vmem:[#allocation16 + $0x68] sm:$0xf0]  ;;  %v3578_v15 = vor.u32 %v4323_v12, %v3575_v14 }
 0x106   :  { %v3703_v14 = vld [vmem:[#allocation19 + $0xa0] sm:$0xf0] }
 0x107   :  { %v1266_v26 = vpack.c.bf16 %v1264_v25, %v1262_v24  ;;  %v4308_v24 = vld [vmem:[#allocation11 + $0x44] sm:$0xf0]  ;;  %v4307_v25 = vld [vmem:[#allocation11 + $0x44] sm:$0xf]  ;;  %1549 = vmatpush.bf16.msra.mxu3 %v3522_v22  ;;  %v3622_v22 = vor.u32 %v4336_v18, %v3621_v16 }
 0x108   :  { %v3510_v27 = vor.u32 %v4308_v24, %v3509_v23  ;;  %v3861_v16 = vld [vmem:[#allocation19 + $0x1c0] sm:$0xf] }
 0x109   :  { %1408 = vmatmul.bf16.vlgmr.msra.gmra.mxu0 %v1266_v26  ;;  %v3511_v26 = vld [vmem:[#allocation11 + $0x48] sm:$0xf0]  ;;  %1762 = vmatpush.bf16.msrb.mxu1 %v3622_v22  ;;  %v4399_v18 = vld [vmem:[#allocation19 + $0x1dc] sm:$0xf0] }
 0x10a   :  { %v3514_v28 = vor.u32 %v4307_v25, %v3511_v26  ;;  %1536 = vmatpush.bf16.msra.mxu2 %v3510_v27  ;;  %v3626_v25 = vor.u32 %v4335_v20, %v3623_v21  ;;  %v3613_v26 = vld [vmem:[#allocation16 + $0x50] sm:$0xf]  ;;  %v4334_v27 = vld [vmem:[#allocation16 + $0x54] sm:$0xf0]  ;;  %v3862_v20 = vor.u32 %v4399_v18, %v3861_v16  ;;  %v3863_v21 = vld [vmem:[#allocation19 + $0x1e0] sm:$0xf0] }
 0x10b   :  { %v3829_v22 = vld [vmem:[#allocation19 + $0x180] sm:$0xf] }
 0x10c   :  { %1550 = vmatpush.bf16.msra.mxu3 %v3514_v28  ;;  %v3957_v18 = vld [vmem:[#allocation19 + $0x280] sm:$0xf] }
 0x10e   :  { %1537 = vmatpush.bf16.msra.mxu2 %v3502_v32 }
 0x110   :  { %v1159_v31 = vpop.f32.mrf.mxu0 }
 0x111   :  { %v1173_v33 = vpop.f32.mrf.mxu1  ;;  %v1160_v38 = vadd.f32 %v1159_v31, %v355_v34  ;;  %v4305_v31 = vld [vmem:[#allocation11 + $0x34] sm:$0xf] }
 0x113   :  { %v1174_v42 = vadd.f32 %v1173_v33, %v1160_v38  ;;  %v3503_v33 = vld [vmem:[#allocation11 + $0x38] sm:$0xf0] }
 0x118   :  { %v1187_v36 = vpop.f32.mrf.mxu2  ;;  %v1161_v40 = vpop.f32.mrf.mxu0 }
 0x119   :  { %v1201_v37 = vpop.f32.mrf.mxu3  ;;  %v1175_v41 = vpop.f32.mrf.mxu1  ;;  %v1162_v45 = vadd.f32 %v1161_v40, %v355_v34  ;;  %v1188_v48 = vadd.f32 %v1187_v36, %v1174_v42  ;;  %v3506_v34 = vor.u32 %v4305_v31, %v3503_v33  ;;  %v4304_v36 = vld [vmem:[#allocation11 + $0x24] sm:$0xf0]  ;;  %v3495_v40 = vld [vmem:[#allocation11 + $0x28] sm:$0xf0]  ;;  %v3485_v42 = vld [vmem:[#allocation11 + $0x10] sm:$0xf]  ;;  %v3614_v33 = vor.u32 %v4334_v27, %v3613_v26 }
 0x11a   :  { %v3494_v38 = vor.u32 %v4304_v36, %v3493_v35  ;;  %v3615_v31 = vld [vmem:[#allocation16 + $0x58] sm:$0xf0]  ;;  %v3605_v35 = vld [vmem:[#allocation16 + $0x40] sm:$0xf]  ;;  %v4332_v36 = vld [vmem:[#allocation16 + $0x44] sm:$0xf0] }
 0x11b   :  { %v1176_v1 = vadd.f32 %v1175_v41, %v1162_v45  ;;  %v1202_v52 = vadd.f32 %v1201_v37, %v1188_v48  ;;  %1551 = vmatpush.bf16.msra.mxu3 %v3506_v34  ;;  %v4303_v37 = vld [vmem:[#allocation11 + $0x24] sm:$0xf]  ;;  %v4302_v45 = vld [vmem:[#allocation11 + $0x14] sm:$0xf0]  ;;  %v3618_v34 = vor.u32 %v4333_v30, %v3615_v31  ;;  %1763 = vmatpush.bf16.msrb.mxu1 %v3614_v33  ;;  %v3831_v26 = vld [vmem:[#allocation19 + $0x1a0] sm:$0xf0] }
 0x11c   :  { %v3498_v41 = vor.u32 %v4303_v37, %v3495_v40  ;;  %1538 = vmatpush.bf16.msra.mxu2 %v3494_v38  ;;  %v3486_v48 = vor.u32 %v4302_v45, %v3485_v42  ;;  %v4331_v37 = vld [vmem:[#allocation16 + $0x44] sm:$0xf]  ;;  %v3607_v38 = vld [vmem:[#allocation16 + $0x48] sm:$0xf0] }
 0x11d   :  { %v4117_v27 = vld [vmem:[#allocation19 + $0x3c0] sm:$0xf]  ;;  %v4459_v30 = vld [vmem:[#allocation19 + $0x3c4] sm:$0xf] }
 0x11e   :  { %v4119_v31 = vld [vmem:[#allocation19 + $0x3e0] sm:$0xf0] }
 0x11f   :  { %1552 = vmatpush.bf16.msra.mxu3 %v3498_v41  ;;  %v3606_v41 = vor.u32 %v4332_v36, %v3605_v35  ;;  %v3797_v35 = vld [vmem:[#allocation19 + $0x140] sm:$0xf] }
 0x120   :  { %v1189_v46 = vpop.f32.mrf.mxu2  ;;  %1539 = vmatpush.bf16.msra.mxu2 %v3486_v48  ;;  %v4383_v36 = vld [vmem:[#allocation19 + $0x15c] sm:$0xf0] }
 0x121   :  { %v1203_v49 = vpop.f32.mrf.mxu3  ;;  %v1190_v53 = vadd.f32 %v1189_v46, %v1176_v1  ;;  %v4301_v46 = vld [vmem:[#allocation11 + $0x14] sm:$0xf]  ;;  %v3487_v1 = vld [vmem:[#allocation11 + $0x18] sm:$0xf0]  ;;  %1764 = vmatpush.bf16.msrb.mxu1 %v3606_v41  ;;  %v4455_v41 = vld [vmem:[#allocation19 + $0x39c] sm:$0xf0] }
 0x123   :  { %v1204_v39 = vadd.f32 %v1203_v49, %v1190_v53  ;;  %v3490_v49 = vor.u32 %v4301_v46, %v3487_v1  ;;  %v3610_v46 = vor.u32 %v4331_v37, %v3607_v38  ;;  %v4379_v37 = vld [vmem:[#allocation19 + $0x144] sm:$0xf] }
 0x124   :  { %v3799_v38 = vld [vmem:[#allocation19 + $0x160] sm:$0xf0] }
 0x125   :  { %1553 = vmatpush.bf16.msra.mxu3 %v3490_v49 }
 0x130   :  { %v1215_v50 = vpop.f32.mrf.mxu0 }
 0x131   :  { %v1229_v51 = vpop.f32.mrf.mxu1  ;;  %v1216_v43 = vadd.f32 %v1215_v50, %v1202_v52  ;;  %v3477_v50 = vld [vmem:[#allocation11] sm:$0xf]  ;;  %v4299_v52 = vld [vmem:[#allocation11 + $0x4] sm:$0xf] }
 0x133   :  { %v1230_v17 = vadd.f32 %v1229_v51, %v1216_v43  ;;  %v4300_v51 = vld [vmem:[#allocation11 + $0x4] sm:$0xf0]  ;;  %v3479_v43 = vld [vmem:[#allocation11 + $0x8] sm:$0xf0] }
 0x134   :  { %v3478_v53 = vor.u32 %v4300_v51, %v3477_v50 }
 0x136   :  { %1540 = vmatpush.bf16.msra.mxu2 %v3478_v53  ;;  %v1568_v53 = vld [vmem:[#allocation5 + $0x8] sm:$0xff] }
 0x138   :  { %v1243_v44 = vpop.f32.mrf.mxu2  ;;  %v1217_v58 = vpop.f32.mrf.mxu0 }
 0x139   :  { %v1257_v47 = vpop.f32.mrf.mxu3  ;;  %v1218_v54 = vadd.f32 %v1217_v58, %v1204_v39  ;;  %v1244_v10 = vadd.f32 %v1243_v44, %v1230_v17  ;;  %v1231_v55 = vpop.f32.mrf.mxu1  ;;  %v3482_v44 = vor.u32 %v4299_v52, %v3479_v43  ;;  %v4322_v39 = vld [vmem:[#allocation13 + $0x38] sm:$0xff]  ;;  %v1567_v52 = vld [vmem:[#allocation5] sm:$0xff] }
 0x13a   :  { %1642 = vmatpush.bf16.msrb.mxu0 %v4322_v39  ;;  %v4489_v17 = vld [vmem:[#allocation10] ss:$0 sm:$0xff]  ;;  %1775 = vmatpush.bf16.msrb.mxu2 %v3634_v19  ;;  %v4395_v19 = vld [vmem:[#allocation19 + $0x1c4] sm:$0xf] }
 0x13b   :  { %v1232_v56 = vadd.f32 %v1231_v55, %v1218_v54  ;;  %v1258_v59 = vadd.f32 %v1257_v47, %v1244_v10  ;;  %1554 = vmatpush.bf16.msra.mxu3 %v3482_v44 }
 0x13d   :  { %v1263_v63 = vmax.f32 %v1258_v59, 0.0 }
 0x13e   :  { %1776 = vmatpush.bf16.msrb.mxu2 %v3626_v25  ;;  %v4387_v25 = vld [vmem:[#allocation19 + $0x184] sm:$0xf] }
 0x13f   :  { %2581 = vmatpush.bf16.msrb.mxu3 %v3862_v20  ;;  %v4423_v20 = vld [vmem:[#allocation19 + $0x29c] sm:$0xf0] }
 0x140   :  { %v1245_v57 = vpop.f32.mrf.mxu2 }
 0x141   :  { %v1246_v60 = vadd.f32 %v1245_v57, %v1232_v56  ;;  %v1259_v61 = vpop.f32.mrf.mxu3 }
 0x142   :  { %1777 = vmatpush.bf16.msrb.mxu2 %v3618_v34  ;;  %v4122_v34 = vor.u32 %v4459_v30, %v4119_v31  ;;  %v3925_v31 = vld [vmem:[#allocation19 + $0x240] sm:$0xf] }
 0x143   :  { %v1260_v62 = vadd.f32 %v1259_v61, %v1246_v60 }
 0x145   :  { %v1265_v0 = vmax.f32 %v1260_v62, 0.0 }
 0x146   :  { %1778 = vmatpush.bf16.msrb.mxu2 %v3610_v46  ;;  %v4087_v46 = vld [vmem:[#allocation19 + $0x3a0] sm:$0xf0] }
 0x147   :  { %v1267_v2 = vpack.c.bf16 %v1265_v0, %v1263_v63  ;;  %v4321_v63 = vld [vmem:[#allocation13 + $0x30] sm:$0xff]  ;;  %v4320_v0 = vld [vmem:[#allocation13 + $0x28] sm:$0xff] }
 0x148   :  { %1643 = vmatpush.bf16.msrb.mxu0 %v4321_v63 }
 0x149   :  { %1422 = vmatmul.bf16.vlgmr.msra.gmra.mxu1 %v1267_v2  ;;  %v4319_v2 = vld [vmem:[#allocation13 + $0x20] sm:$0xff] }
 0x14c   :  { %1644 = vmatpush.bf16.msrb.mxu0 %v4320_v0  ;;  %v3591_v0 = vld [vmem:[#allocation16 + $0x28] sm:$0xf0] }
 0x150   :  { %1645 = vmatpush.bf16.msrb.mxu0 %v4319_v2 }
 0x154   :  { %1646 = vmatpush.bf16.msrb.mxu0 %v4318_v3  ;;  %v3581_v3 = vld [vmem:[#allocation16 + $0x10] sm:$0xf] }
 0x158   :  { %1647 = vmatpush.bf16.msrb.mxu0 %v4317_v4  ;;  %v4326_v4 = vld [vmem:[#allocation16 + $0x14] sm:$0xf0] }
 0x15c   :  { %1648 = vmatpush.bf16.msrb.mxu0 %v4316_v5  ;;  %v4325_v5 = vld [vmem:[#allocation16 + $0x14] sm:$0xf] }
 0x160   :  { %1649 = vmatpush.bf16.msrb.mxu0 %v4315_v6  ;;  %v3582_v6 = vor.u32 %v4326_v4, %v3581_v3  ;;  %v3989_v3 = vld [vmem:[#allocation19 + $0x2c0] sm:$0xf] }
 0x186   :  { %v1409_v47 = vpop.f32.mrf.mxu0 }
 0x187   :  { %v1410_v10 = vadd.f32 %v4489_v17, %v1409_v47 }
 0x18e   :  { %v1411_v54 = vpop.f32.mrf.mxu0 }
 0x18f   :  { %v1412_v55 = vadd.f32 %v4489_v17, %v1411_v54  ;;  %v3597_v54 = vld [vmem:[#allocation16 + $0x30] sm:$0xf] }
 0x1c6   :  { %v1423_v58 = vpop.f32.mrf.mxu1 }
 0x1c7   :  { %v1424_v56 = vadd.f32 %v1423_v58, %v1410_v10  ;;  %v4330_v10 = vld [vmem:[#allocation16 + $0x34] sm:$0xf0] }
 0x1c9   :  { %v1428_v60 = vmax.f32 %v1424_v56, 0.0  ;;  %v3598_v56 = vor.u32 %v4330_v10, %v3597_v54  ;;  %v4021_v54 = vld [vmem:[#allocation19 + $0x300] sm:$0xf] }
 0x1cb   :  { %1765 = vmatpush.bf16.msrb.mxu1 %v3598_v56  ;;  %v4435_v56 = vld [vmem:[#allocation19 + $0x304] sm:$0xf] }
 0x1ce   :  { %v1425_v57 = vpop.f32.mrf.mxu1 }
 0x1cf   :  { %v1426_v59 = vadd.f32 %v1425_v57, %v1412_v55  ;;  %v4329_v55 = vld [vmem:[#allocation16 + $0x34] sm:$0xf]  ;;  %v3599_v57 = vld [vmem:[#allocation16 + $0x38] sm:$0xf0] }
 0x1d1   :  { %v1429_v61 = vmax.f32 %v1426_v59, 0.0  ;;  %v3602_v59 = vor.u32 %v4329_v55, %v3599_v57  ;;  %v4439_v55 = vld [vmem:[#allocation19 + $0x31c] sm:$0xf0]  ;;  %v4023_v57 = vld [vmem:[#allocation19 + $0x320] sm:$0xf0] }
 0x1d3   :  { %v1430_v62 = vpack.c.bf16 %v1429_v61, %v1428_v60  ;;  %1779 = vmatpush.bf16.msrb.mxu2 %v3602_v59  ;;  %v3589_v60 = vld [vmem:[#allocation16 + $0x20] sm:$0xf]  ;;  %v4328_v61 = vld [vmem:[#allocation16 + $0x24] sm:$0xf0] }
 0x1d4   :  { %v3590_v63 = vor.u32 %v4328_v61, %v3589_v60  ;;  %v3733_v60 = vld [vmem:[#allocation19 + $0xc0] sm:$0xf] }
 0x1d5   :  { %1541 = vmatmul.bf16.vlgmr.msra.gmra.mxu2 %v1430_v62  ;;  %1555 = vmatmul.bf16.vlgmr.msra.gmra.mxu3 %v1430_v62  ;;  %v4327_v62 = vld [vmem:[#allocation16 + $0x24] sm:$0xf] }
 0x1d6   :  { %v3594_v2 = vor.u32 %v4327_v62, %v3591_v0  ;;  %1766 = vmatpush.bf16.msrb.mxu1 %v3590_v63  ;;  %v4367_v61 = vld [vmem:[#allocation19 + $0xdc] sm:$0xf0]  ;;  %v4363_v62 = vld [vmem:[#allocation19 + $0xc4] sm:$0xf]  ;;  %v4022_v0 = vor.u32 %v4439_v55, %v4021_v54  ;;  %v4125_v54 = vld [vmem:[#allocation19 + $0x3c8] sm:$0xf] }
 0x1d7   :  { %v3735_v63 = vld [vmem:[#allocation19 + $0xe0] sm:$0xf0]  ;;  %v3734_v4 = vor.u32 %v4367_v61, %v3733_v60 }
 0x1d8   :  { %1780 = vmatpush.bf16.msrb.mxu2 %v3594_v2  ;;  %v4026_v2 = vor.u32 %v4435_v56, %v4023_v57  ;;  %v4460_v57 = vld [vmem:[#allocation19 + $0x3cc] sm:$0xf] }
 0x1da   :  { %1767 = vmatpush.bf16.msrb.mxu1 %v3582_v6  ;;  %v4427_v6 = vld [vmem:[#allocation19 + $0x2c4] sm:$0xf] }
 0x258   :  { %v1542_v23 = vpop.f32.mrf.mxu2  ;;  %v1556_v24 = vpop.f32.mrf.mxu3 }
 0x259   :  { %v1543_v28 = vadd.f32 %v1542_v23, %v1449_v8  ;;  %v1557_v29 = vadd.f32 %v1556_v24, %v1450_v9  ;;  %v4391_v23 = vld [vmem:[#allocation19 + $0x19c] sm:$0xf0]  ;;  %v3866_v24 = vor.u32 %v4395_v19, %v3863_v21  ;;  %v4419_v21 = vld [vmem:[#allocation19 + $0x284] sm:$0xf] }
 0x25b   :  { %2821 = vst [vmem:[#allocation21] sm:$0xff] %v1543_v28  ;;  %v1561_v32 = vmul.f32 0.5, %v1557_v29 }
 0x25c   :  { %2822 = vst [vmem:[#allocation21 + $0x8] sm:$0xff] %v1557_v29  ;;  %v4463_v29 = vld [vmem:[#allocation19 + $0x3dc] sm:$0xf0] }
 0x25d   :  { %v1563_v40 = vmul.f32 1.442695, %v1561_v32  ;;  %v3834_v32 = vor.u32 %v4387_v25, %v3831_v26  ;;  %v4118_v33 = vor.u32 %v4463_v29, %v4117_v27  ;;  %v3669_v25 = vld [vmem:[#allocation19 + $0x40] sm:$0xf]  ;;  %v4347_v27 = vld [vmem:[#allocation19 + $0x44] sm:$0xf]  ;;  %v3958_v29 = vor.u32 %v4423_v20, %v3957_v18 }
 0x25e   :  { %v4351_v26 = vld [vmem:[#allocation19 + $0x5c] sm:$0xf0]  ;;  %v3807_v18 = vld [vmem:[#allocation19 + $0x168] sm:$0xf0] }
 0x25f   :  { %4491 = vpow2.f32 %v1563_v40  ;;  %v4085_v40 = vld [vmem:[#allocation19 + $0x380] sm:$0xf]  ;;  %2595 = vmatpush.bf16.msra.mxu0 %v4118_v33 }
 0x260   :  { %v1544_v42 = vpop.f32.mrf.mxu2  ;;  %v1558_v45 = vpop.f32.mrf.mxu3  ;;  %v4415_v33 = vld [vmem:[#allocation19 + $0x25c] sm:$0xf0] }
 0x261   :  { %v1545_v48 = vadd.f32 %v1544_v42, %v1449_v8  ;;  %v1559_v1 = vadd.f32 %v1558_v45, %v1450_v9  ;;  %v3586_v8 = vor.u32 %v4325_v5, %v3583_v7  ;;  %v3573_v9 = vld [vmem:[#allocation16] sm:$0xf]  ;;  %v4086_v42 = vor.u32 %v4455_v41, %v4085_v40  ;;  %v4451_v45 = vld [vmem:[#allocation19 + $0x384] sm:$0xf] }
 0x262   :  { %v3574_v13 = vor.u32 %v4324_v11, %v3573_v9  ;;  %v4431_v5 = vld [vmem:[#allocation19 + $0x2dc] sm:$0xf0]  ;;  %v3991_v7 = vld [vmem:[#allocation19 + $0x2e0] sm:$0xf0] }
 0x263   :  { %2823 = vst [vmem:[#allocation21 + $0x10] sm:$0xff] %v1545_v48  ;;  %v1562_v49 = vmul.f32 0.5, %v1559_v1  ;;  %1781 = vmatpush.bf16.msrb.mxu2 %v3586_v8  ;;  %2596 = vmatpush.bf16.msra.mxu0 %v4086_v42  ;;  %v3738_v8 = vor.u32 %v4363_v62, %v3735_v63  ;;  %v3701_v9 = vld [vmem:[#allocation19 + $0x80] sm:$0xf]  ;;  %v3994_v16 = vor.u32 %v4427_v6, %v3991_v7  ;;  %v4339_v41 = vld [vmem:[#allocation19 + $0x4] sm:$0xf] }
 0x264   :  { %2824 = vst [vmem:[#allocation21 + $0x18] sm:$0xff] %v1559_v1  ;;  %1768 = vmatpush.bf16.msrb.mxu1 %v3574_v13  ;;  %v4090_v1 = vor.u32 %v4451_v45, %v4087_v46  ;;  %v4359_v11 = vld [vmem:[#allocation19 + $0x9c] sm:$0xf0]  ;;  %v4355_v13 = vld [vmem:[#allocation19 + $0x84] sm:$0xf] }
 0x265   :  { %v1565_v50 = vmul.f32 1.442695, %v1562_v49  ;;  %v4492_v51 = vpop.eup %4491  ;;  %v3765_v49 = vld [vmem:[#allocation19 + $0x100] sm:$0xf]  ;;  %v3702_v19 = vor.u32 %v4359_v11, %v3701_v9  ;;  %v3639_v45 = vld [vmem:[#allocation19 + $0x20] sm:$0xf0] }
 0x266   :  { %v1569_v43 = vmul.f32 %v4492_v51, %v1567_v52  ;;  %v3802_v51 = vor.u32 %v4379_v37, %v3799_v38  ;;  %v4053_v52 = vld [vmem:[#allocation19 + $0x340] sm:$0xf]  ;;  %v3869_v46 = vld [vmem:[#allocation19 + $0x1c8] sm:$0xf]  ;;  %v3642_v55 = vor.u32 %v4339_v41, %v3639_v45  ;;  %v4452_v11 = vld [vmem:[#allocation19 + $0x38c] sm:$0xf] }
 0x267   :  { %4493 = vpow2.f32 %v1565_v50  ;;  %1782 = vmatpush.bf16.msrb.mxu2 %v3578_v15  ;;  %v4375_v50 = vld [vmem:[#allocation19 + $0x11c] sm:$0xf0]  ;;  %v3990_v15 = vor.u32 %v4431_v5, %v3989_v3  ;;  %v3837_v62 = vld [vmem:[#allocation19 + $0x188] sm:$0xf]  ;;  %v3839_v3 = vld [vmem:[#allocation19 + $0x1a8] sm:$0xf0] }
 0x268   :  { %v1571_v47 = vadd.f32 %v1569_v43, %v1543_v28  ;;  %v3830_v28 = vor.u32 %v4391_v23, %v3829_v22  ;;  %2609 = vmatpush.bf16.msra.mxu1 %v3866_v24  ;;  %v4443_v43 = vld [vmem:[#allocation19 + $0x344] sm:$0xf]  ;;  %v3766_v10 = vor.u32 %v4375_v50, %v3765_v49  ;;  %v4490_v23 = vld [vmem:[#allocation14] ss:$0 sm:$0xff]  ;;  %v3706_v24 = vor.u32 %v4355_v13, %v3703_v14  ;;  %v3637_v38 = vld [vmem:[#allocation19] sm:$0xf] }
 0x269   :  { %v3959_v22 = vld [vmem:[#allocation19 + $0x2a0] sm:$0xf0]  ;;  %v4343_v40 = vld [vmem:[#allocation19 + $0x1c] sm:$0xf0]  ;;  %v4396_v49 = vld [vmem:[#allocation19 + $0x1cc] sm:$0xf] }
 0x26a   :  { %2582 = vmatpush.bf16.msrb.mxu3 %v3830_v28  ;;  %v3671_v28 = vld [vmem:[#allocation19 + $0x60] sm:$0xf0]  ;;  %v3962_v30 = vor.u32 %v4419_v21, %v3959_v22  ;;  %v3871_v50 = vld [vmem:[#allocation19 + $0x1e8] sm:$0xf0]  ;;  %v4392_v63 = vld [vmem:[#allocation19 + $0x1a4] sm:$0xf0] }
 0x26b   :  { %2623 = vmatpush.bf16.msra.mxu2 %v4122_v34  ;;  %v4411_v34 = vld [vmem:[#allocation19 + $0x244] sm:$0xf]  ;;  %v3674_v37 = vor.u32 %v4347_v27, %v3671_v28  ;;  %v3874_v61 = vor.u32 %v4396_v49, %v3871_v50  ;;  %v4093_v7 = vld [vmem:[#allocation19 + $0x388] sm:$0xf]  ;;  %v3838_v9 = vor.u32 %v4392_v63, %v3837_v62  ;;  %2850 = dma.vmem_to_hbm [thread:$0]  %s2843_s30, 512, %s2845_s28, [#allocation22], %s4841_s29, %s4841_s29, %s4842_s6  }
 0x26c   :  { %2610 = vmatpush.bf16.msra.mxu1 %v3834_v32  ;;  %v3670_v32 = vor.u32 %v4351_v26, %v3669_v25  ;;  %v3805_v14 = vld [vmem:[#allocation19 + $0x148] sm:$0xf]  ;;  %v4372_v25 = vld [vmem:[#allocation19 + $0x10c] sm:$0xf] }
 0x26d   :  { %v4494_v44 = vpop.eup %4493  ;;  %v3775_v26 = vld [vmem:[#allocation19 + $0x128] sm:$0xf0]  ;;  %v4440_v45 = vld [vmem:[#allocation19 + $0x324] sm:$0xf0] }
 0x26e   :  { %v1570_v39 = vmul.f32 %v4494_v44, %v1568_v53  ;;  %v4447_v53 = vld [vmem:[#allocation19 + $0x35c] sm:$0xf0]  ;;  %v4371_v44 = vld [vmem:[#allocation19 + $0x104] sm:$0xf]  ;;  %v3778_v28 = vor.u32 %v4372_v25, %v3775_v26  ;;  %v3709_v50 = vld [vmem:[#allocation19 + $0x88] sm:$0xf] }
 0x26f   :  { %2624 = vmatpush.bf16.msra.mxu2 %v4090_v1  ;;  %v3965_v62 = vld [vmem:[#allocation19 + $0x288] sm:$0xf]  ;;  %v1675_v25 = vld [vmem:[#allocation17] sm:$0x3] }
 0x270   :  { %v1572_v58 = vadd.f32 %v1570_v39, %v1545_v48  ;;  %v3798_v48 = vor.u32 %v4383_v36, %v3797_v35  ;;  %v3767_v39 = vld [vmem:[#allocation19 + $0x120] sm:$0xf0]  ;;  %2611 = vmatpush.bf16.msra.mxu1 %v3802_v51  ;;  %v3926_v51 = vor.u32 %v4415_v33, %v3925_v31  ;;  %v4444_v31 = vld [vmem:[#allocation19 + $0x34c] sm:$0xf]  ;;  %v4424_v63 = vld [vmem:[#allocation19 + $0x2a4] sm:$0xf0] }
 0x271   :  { %v3770_v59 = vor.u32 %v4371_v44, %v3767_v39  ;;  %v3927_v35 = vld [vmem:[#allocation19 + $0x260] sm:$0xf0]  ;;  %v4407_v44 = vld [vmem:[#allocation19 + $0x21c] sm:$0xf0]  ;;  %v4063_v33 = vld [vmem:[#allocation19 + $0x368] sm:$0xf0] }
 0x272   :  { %v1573_v17 = vpack.c.bf16 %v1572_v58, %v1571_v47  ;;  %v4055_v47 = vld [vmem:[#allocation19 + $0x360] sm:$0xf0]  ;;  %v4054_v58 = vor.u32 %v4447_v53, %v4053_v52  ;;  %2583 = vmatpush.bf16.msrb.mxu3 %v3798_v48  ;;  %v4400_v48 = vld [vmem:[#allocation19 + $0x1e4] sm:$0xf0]  ;;  %v3930_v52 = vor.u32 %v4411_v34, %v3927_v35  ;;  %v3893_v53 = vld [vmem:[#allocation19 + $0x200] sm:$0xf]  ;;  %v4066_v34 = vor.u32 %v4444_v31, %v4063_v33 }
 0x273   :  { %v4403_v39 = vld [vmem:[#allocation19 + $0x204] sm:$0xf]  ;;  %v3870_v56 = vor.u32 %v4400_v48, %v3869_v46  ;;  %v3741_v35 = vld [vmem:[#allocation19 + $0xc8] sm:$0xf]  ;;  %v4436_v46 = vld [vmem:[#allocation19 + $0x30c] sm:$0xf] }
 0x274   :  { %1650 = vmatmul.bf16.vlgmr.msrb.gmra.mxu0 %v1573_v17  ;;  %v4058_v17 = vor.u32 %v4443_v43, %v4055_v47  ;;  %2612 = vmatpush.bf16.msra.mxu1 %v3770_v59  ;;  %v3638_v43 = vor.u32 %v4343_v40, %v3637_v38  ;;  %v3895_v47 = vld [vmem:[#allocation19 + $0x220] sm:$0xf0]  ;;  %v4127_v59 = vld [vmem:[#allocation19 + $0x3e8] sm:$0xf0] }
 0x275   :  { %2597 = vmatpush.bf16.msra.mxu0 %v4054_v58  ;;  %v4130_v6 = vor.u32 %v4460_v57, %v4127_v59  ;;  %v3743_v40 = vld [vmem:[#allocation19 + $0xe8] sm:$0xf0] }
 0x276   :  { %2625 = vmatpush.bf16.msra.mxu2 %v4058_v17  ;;  %2584 = vmatpush.bf16.msrb.mxu3 %v3766_v10  ;;  %v4464_v10 = vld [vmem:[#allocation19 + $0x3e4] sm:$0xf0]  ;;  %v4348_v57 = vld [vmem:[#allocation19 + $0x4c] sm:$0xf] }
 0x277   :  { %v4126_v5 = vor.u32 %v4464_v10, %v4125_v54  ;;  %v3999_v54 = vld [vmem:[#allocation19 + $0x2e8] sm:$0xf0] }
 0x278   :  { %2613 = vmatpush.bf16.msra.mxu1 %v3738_v8  ;;  %v4456_v8 = vld [vmem:[#allocation19 + $0x3a4] sm:$0xf0] }
 0x279   :  { %2598 = vmatpush.bf16.msra.mxu0 %v4022_v0  ;;  %v3894_v0 = vor.u32 %v4407_v44, %v3893_v53 }
 0x27a   :  { %2626 = vmatpush.bf16.msra.mxu2 %v4026_v2  ;;  %2585 = vmatpush.bf16.msrb.mxu3 %v3734_v4  ;;  %v4388_v2 = vld [vmem:[#allocation19 + $0x18c] sm:$0xf]  ;;  %v3898_v4 = vor.u32 %v4403_v39, %v3895_v47  ;;  %v3997_v39 = vld [vmem:[#allocation19 + $0x2c8] sm:$0xf] }
 0x27b   :  { %v3842_v13 = vor.u32 %v4388_v2, %v3839_v3  ;;  %v4432_v47 = vld [vmem:[#allocation19 + $0x2e4] sm:$0xf0]  ;;  %v3966_v2 = vor.u32 %v4424_v63, %v3965_v62  ;;  %v3967_v3 = vld [vmem:[#allocation19 + $0x2a8] sm:$0xf0]  ;;  %v4457_v62 = vld [vmem:[#allocation19 + $0x3ac] sm:$0xf0] }
 0x27c   :  { %2614 = vmatpush.bf16.msra.mxu1 %v3706_v24  ;;  %v4376_v24 = vld [vmem:[#allocation19 + $0x124] sm:$0xf0]  ;;  %v4453_v63 = vld [vmem:[#allocation19 + $0x394] sm:$0xf] }
 0x27d   :  { %2599 = vmatpush.bf16.msra.mxu0 %v3990_v15  ;;  %v4384_v15 = vld [vmem:[#allocation19 + $0x164] sm:$0xf0] }
 0x27e   :  { %2627 = vmatpush.bf16.msra.mxu2 %v3994_v16  ;;  %2586 = vmatpush.bf16.msrb.mxu3 %v3702_v19  ;;  %v4380_v16 = vld [vmem:[#allocation19 + $0x14c] sm:$0xf]  ;;  %v4094_v19 = vor.u32 %v4456_v8, %v4093_v7  ;;  %v3806_v21 = vor.u32 %v4384_v15, %v3805_v14 }
 0x27f   :  { %v3810_v22 = vor.u32 %v4380_v16, %v3807_v18  ;;  %v4340_v7 = vld [vmem:[#allocation19 + $0xc] sm:$0xf] }
 0x280   :  { %2615 = vmatpush.bf16.msra.mxu1 %v3674_v37  ;;  %v4364_v37 = vld [vmem:[#allocation19 + $0xcc] sm:$0xf] }
 0x281   :  { %2600 = vmatpush.bf16.msra.mxu0 %v3958_v29  ;;  %v4061_v29 = vld [vmem:[#allocation19 + $0x348] sm:$0xf]  ;;  %v3746_v41 = vor.u32 %v4364_v37, %v3743_v40  ;;  %v4412_v14 = vld [vmem:[#allocation19 + $0x24c] sm:$0xf] }
 0x282   :  { %2628 = vmatpush.bf16.msra.mxu2 %v3962_v30  ;;  %2587 = vmatpush.bf16.msrb.mxu3 %v3670_v32  ;;  %v4448_v30 = vld [vmem:[#allocation19 + $0x364] sm:$0xf0]  ;;  %v3935_v15 = vld [vmem:[#allocation19 + $0x268] sm:$0xf0] }
 0x283   :  { %v4062_v32 = vor.u32 %v4448_v30, %v4061_v29  ;;  %v3938_v18 = vor.u32 %v4412_v14, %v3935_v15  ;;  %v1678_v30 = vperm.slane %v1675_v25, 1  ;;  %v4071_v14 = vld [vmem:[#allocation19 + $0x370] sm:$0xf0] }
 0x284   :  { %2616 = vmatpush.bf16.msra.mxu1 %v3642_v55  ;;  %v3677_v55 = vld [vmem:[#allocation19 + $0x48] sm:$0xf] }
 0x285   :  { %2601 = vmatpush.bf16.msra.mxu0 %v3926_v51  ;;  %v4360_v51 = vld [vmem:[#allocation19 + $0xa4] sm:$0xf0] }
 0x286   :  { %2629 = vmatpush.bf16.msra.mxu2 %v3930_v52  ;;  %2588 = vmatpush.bf16.msrb.mxu3 %v3638_v43  ;;  %v4356_v52 = vld [vmem:[#allocation19 + $0x8c] sm:$0xf]  ;;  %v3710_v53 = vor.u32 %v4360_v51, %v3709_v50  ;;  %v4133_v51 = vld [vmem:[#allocation19 + $0x3d0] sm:$0xf] }
 0x287   :  { %v3711_v43 = vld [vmem:[#allocation19 + $0xa8] sm:$0xf0] }
 0x288   :  { %v3714_v44 = vor.u32 %v4356_v52, %v3711_v43  ;;  %v4461_v43 = vld [vmem:[#allocation19 + $0x3d4] sm:$0xf] }
 0x289   :  { %2602 = vmatpush.bf16.msra.mxu0 %v3894_v0  ;;  %v4420_v0 = vld [vmem:[#allocation19 + $0x28c] sm:$0xf] }
 0x28a   :  { %2637 = vmatpush.bf16.msra.mxu3 %v3870_v56  ;;  %2630 = vmatpush.bf16.msra.mxu2 %v3898_v4  ;;  %v4352_v56 = vld [vmem:[#allocation19 + $0x64] sm:$0xf0]  ;;  %v3970_v4 = vor.u32 %v4420_v0, %v3967_v3  ;;  %v4103_v0 = vld [vmem:[#allocation19 + $0x3b0] sm:$0xf0] }
 0x28b   :  { %v3678_v59 = vor.u32 %v4352_v56, %v3677_v55  ;;  %v4381_v55 = vld [vmem:[#allocation19 + $0x154] sm:$0xf] }
 0x28c   :  { %v3815_v56 = vld [vmem:[#allocation19 + $0x170] sm:$0xf0] }
 0x28d   :  { %2651 = vmatpush.bf16.msrb.mxu0 %v4126_v5  ;;  %v3645_v5 = vld [vmem:[#allocation19 + $0x8] sm:$0xf]  ;;  %v3818_v3 = vor.u32 %v4381_v55, %v3815_v56  ;;  %v3885_v55 = vld [vmem:[#allocation19 + $0x1d8] sm:$0xf] }
 0x28e   :  { %2638 = vmatpush.bf16.msra.mxu3 %v3838_v9  ;;  %v3647_v9 = vld [vmem:[#allocation19 + $0x28] sm:$0xf0]  ;;  %v4402_v56 = vld [vmem:[#allocation19 + $0x1f4] sm:$0xf0] }
 0x291   :  { %2652 = vmatpush.bf16.msrb.mxu0 %v4094_v19  ;;  %v3901_v19 = vld [vmem:[#allocation19 + $0x208] sm:$0xf] }
 0x292   :  { %2639 = vmatpush.bf16.msra.mxu3 %v3806_v21 }
 0x295   :  { %2653 = vmatpush.bf16.msrb.mxu0 %v4062_v32  ;;  %v3877_v32 = vld [vmem:[#allocation19 + $0x1d0] sm:$0xf] }
 0x2f1   :  { %v1651_v12 = vpop.f32.mrf.mxu0 }
 0x2f2   :  { %v1652_v36 = vadd.f32 %v4490_v23, %v1651_v12  ;;  %v4095_v12 = vld [vmem:[#allocation19 + $0x3a8] sm:$0xf0] }
 0x2f3   :  { %v4098_v20 = vor.u32 %v4452_v11, %v4095_v12  ;;  %v3650_v11 = vor.u32 %v4340_v7, %v3647_v9  ;;  %v3933_v12 = vld [vmem:[#allocation19 + $0x248] sm:$0xf]  ;;  %v3783_v7 = vld [vmem:[#allocation19 + $0x130] sm:$0xf0]  ;;  %v4106_v9 = vor.u32 %v4453_v63, %v4103_v0  ;;  %v3941_v63 = vld [vmem:[#allocation19 + $0x250] sm:$0xf] }
 0x2f4   :  { %v1656_v58 = vmax.f32 %v1652_v36, 0.0  ;;  %v4368_v36 = vld [vmem:[#allocation19 + $0xe4] sm:$0xf0]  ;;  %v4417_v0 = vld [vmem:[#allocation19 + $0x26c] sm:$0xf0] }
 0x2f5   :  { %v3742_v38 = vor.u32 %v4368_v36, %v3741_v35  ;;  %v4397_v35 = vld [vmem:[#allocation19 + $0x1d4] sm:$0xf] }
 0x2f6   :  { %v3879_v36 = vld [vmem:[#allocation19 + $0x1f0] sm:$0xf0] }
 0x2f9   :  { %v1653_v42 = vpop.f32.mrf.mxu0 }
 0x2fa   :  { %v1654_v1 = vadd.f32 %v4490_v23, %v1653_v42  ;;  %v3773_v23 = vld [vmem:[#allocation19 + $0x108] sm:$0xf] }
 0x2fb   :  { %v3774_v27 = vor.u32 %v4376_v24, %v3773_v23  ;;  %v4029_v42 = vld [vmem:[#allocation19 + $0x308] sm:$0xf]  ;;  %v3903_v23 = vld [vmem:[#allocation19 + $0x228] sm:$0xf0] }
 0x2fc   :  { %v1657_v17 = vmax.f32 %v1654_v1, 0.0  ;;  %v4030_v48 = vor.u32 %v4440_v45, %v4029_v42  ;;  %v4031_v1 = vld [vmem:[#allocation19 + $0x328] sm:$0xf0]  ;;  %v3845_v42 = vld [vmem:[#allocation19 + $0x190] sm:$0xf] }
 0x2fd   :  { %2640 = vmatpush.bf16.msra.mxu3 %v3774_v27  ;;  %v4034_v49 = vor.u32 %v4436_v46, %v4031_v1  ;;  %v1677_v27 = vperm.slane %v1675_v25, 0  ;;  %v4389_v1 = vld [vmem:[#allocation19 + $0x194] sm:$0xf]  ;;  %v4441_v25 = vld [vmem:[#allocation19 + $0x32c] sm:$0xf0] }
 0x2fe   :  { %v1658_v60 = vpack.c.bf16 %v1657_v17, %v1656_v58  ;;  %2654 = vmatpush.bf16.msrb.mxu0 %v4030_v48  ;;  %v4428_v58 = vld [vmem:[#allocation19 + $0x2cc] sm:$0xf]  ;;  %v3998_v17 = vor.u32 %v4432_v47, %v3997_v39  ;;  %v4393_v48 = vld [vmem:[#allocation19 + $0x1ac] sm:$0xf0] }
 0x2ff   :  { %v4002_v10 = vor.u32 %v4428_v58, %v3999_v54  ;;  %v3846_v39 = vor.u32 %v4393_v48, %v3845_v42  ;;  %v3813_v58 = vld [vmem:[#allocation19 + $0x150] sm:$0xf] }
 0x300   :  { %1769 = vmatmul.bf16.vlgmr.msrb.gmra.mxu1 %v1658_v60  ;;  %1783 = vmatmul.bf16.vlgmr.msrb.gmra.mxu2 %v1658_v60  ;;  %v3679_v60 = vld [vmem:[#allocation19 + $0x68] sm:$0xf0]  ;;  %v4353_v48 = vld [vmem:[#allocation19 + $0x6c] sm:$0xf0] }
 0x301   :  { %2665 = vmatpush.bf16.msrb.mxu1 %v3874_v61  ;;  %2679 = vmatpush.bf16.msrb.mxu2 %v4130_v6  ;;  %v3682_v61 = vor.u32 %v4348_v57, %v3679_v60  ;;  %v4344_v6 = vld [vmem:[#allocation19 + $0x24] sm:$0xf0]  ;;  %v4101_v60 = vld [vmem:[#allocation19 + $0x390] sm:$0xf] }
 0x302   :  { %2641 = vmatpush.bf16.msra.mxu3 %v3742_v38  ;;  %2655 = vmatpush.bf16.msrb.mxu0 %v3998_v17  ;;  %v3646_v8 = vor.u32 %v4344_v6, %v3645_v5  ;;  %v4385_v17 = vld [vmem:[#allocation19 + $0x16c] sm:$0xf0]  ;;  %v4373_v6 = vld [vmem:[#allocation19 + $0x114] sm:$0xf] }
 0x303   :  { %v4377_v5 = vld [vmem:[#allocation19 + $0x12c] sm:$0xf0] }
 0x305   :  { %2666 = vmatpush.bf16.msrb.mxu1 %v3842_v13  ;;  %2680 = vmatpush.bf16.msrb.mxu2 %v4098_v20  ;;  %v4416_v13 = vld [vmem:[#allocation19 + $0x264] sm:$0xf0] }
 0x306   :  { %2642 = vmatpush.bf16.msra.mxu3 %v3710_v53  ;;  %2656 = vmatpush.bf16.msrb.mxu0 %v3966_v2  ;;  %v3934_v16 = vor.u32 %v4416_v13, %v3933_v12  ;;  %v4408_v20 = vld [vmem:[#allocation19 + $0x224] sm:$0xf0]  ;;  %v4465_v53 = vld [vmem:[#allocation19 + $0x3ec] sm:$0xf0]  ;;  %v3814_v2 = vor.u32 %v4385_v17, %v3813_v58  ;;  %v4445_v13 = vld [vmem:[#allocation19 + $0x354] sm:$0xf] }
 0x307   :  { %v3902_v21 = vor.u32 %v4408_v20, %v3901_v19  ;;  %v4134_v57 = vor.u32 %v4465_v53, %v4133_v51  ;;  %v4449_v12 = vld [vmem:[#allocation19 + $0x36c] sm:$0xf0]  ;;  %v4365_v20 = vld [vmem:[#allocation19 + $0xd4] sm:$0xf] }
 0x308   :  { %v4369_v19 = vld [vmem:[#allocation19 + $0xec] sm:$0xf0] }
 0x309   :  { %2667 = vmatpush.bf16.msrb.mxu1 %v3810_v22  ;;  %2681 = vmatpush.bf16.msrb.mxu2 %v4066_v34  ;;  %v4404_v22 = vld [vmem:[#allocation19 + $0x20c] sm:$0xf]  ;;  %v4401_v34 = vld [vmem:[#allocation19 + $0x1ec] sm:$0xf0] }
 0x30a   :  { %2643 = vmatpush.bf16.msra.mxu3 %v3678_v59  ;;  %2657 = vmatpush.bf16.msrb.mxu0 %v3934_v16  ;;  %v3906_v24 = vor.u32 %v4404_v22, %v3903_v23  ;;  %v3878_v40 = vor.u32 %v4401_v34, %v3877_v32  ;;  %v3786_v16 = vor.u32 %v4373_v6, %v3783_v7  ;;  %v4357_v32 = vld [vmem:[#allocation19 + $0x94] sm:$0xf]  ;;  %v4425_v53 = vld [vmem:[#allocation19 + $0x2ac] sm:$0xf0] }
 0x30b   :  { %v4074_v23 = vor.u32 %v4445_v13, %v4071_v14  ;;  %v3653_v58 = vld [vmem:[#allocation19 + $0x10] sm:$0xf]  ;;  %v3886_v6 = vor.u32 %v4402_v56, %v3885_v55  ;;  %v3855_v14 = vld [vmem:[#allocation19 + $0x1b8] sm:$0xf0]  ;;  %v4045_v55 = vld [vmem:[#allocation19 + $0x318] sm:$0xf] }
 0x30c   :  { %v4345_v17 = vld [vmem:[#allocation19 + $0x2c] sm:$0xf0]  ;;  %v4442_v56 = vld [vmem:[#allocation19 + $0x334] sm:$0xf0] }
 0x30d   :  { %2668 = vmatpush.bf16.msrb.mxu1 %v3778_v28  ;;  %2682 = vmatpush.bf16.msrb.mxu2 %v4034_v49  ;;  %v3847_v49 = vld [vmem:[#allocation19 + $0x1b0] sm:$0xf0] }
 0x30e   :  { %2644 = vmatpush.bf16.msra.mxu3 %v3646_v8  ;;  %2658 = vmatpush.bf16.msrb.mxu0 %v3902_v21  ;;  %v3850_v47 = vor.u32 %v4389_v1, %v3847_v49  ;;  %v4102_v8 = vor.u32 %v4457_v62, %v4101_v60  ;;  %v3751_v21 = vld [vmem:[#allocation19 + $0xf0] sm:$0xf0]  ;;  %v4398_v60 = vld [vmem:[#allocation19 + $0x1dc] sm:$0xf] }
 0x30f   :  { %v4349_v1 = vld [vmem:[#allocation19 + $0x54] sm:$0xf]  ;;  %v3887_v62 = vld [vmem:[#allocation19 + $0x1f8] sm:$0xf0] }
 0x310   :  { %v3687_v49 = vld [vmem:[#allocation19 + $0x70] sm:$0xf0]  ;;  %v3890_v7 = vor.u32 %v4398_v60, %v3887_v62 }
 0x311   :  { %2669 = vmatpush.bf16.msrb.mxu1 %v3746_v41  ;;  %2683 = vmatpush.bf16.msrb.mxu2 %v4002_v10  ;;  %v3882_v41 = vor.u32 %v4397_v35, %v3879_v36  ;;  %v4005_v36 = vld [vmem:[#allocation19 + $0x2d0] sm:$0xf] }
 0x315   :  { %2670 = vmatpush.bf16.msrb.mxu1 %v3714_v44  ;;  %2684 = vmatpush.bf16.msrb.mxu2 %v3970_v4  ;;  %v4135_v44 = vld [vmem:[#allocation19 + $0x3f0] sm:$0xf0]  ;;  %v3781_v4 = vld [vmem:[#allocation19 + $0x110] sm:$0xf] }
 0x316   :  { %v4138_v59 = vor.u32 %v4461_v43, %v4135_v44  ;;  %v3782_v15 = vor.u32 %v4377_v5, %v3781_v4  ;;  %v4421_v43 = vld [vmem:[#allocation19 + $0x294] sm:$0xf]  ;;  %v3654_v4 = vor.u32 %v4345_v17, %v3653_v58  ;;  %v4366_v58 = vld [vmem:[#allocation19 + $0xdc] sm:$0xf] }
 0x317   :  { %v3975_v44 = vld [vmem:[#allocation19 + $0x2b0] sm:$0xf0]  ;;  %v3759_v17 = vld [vmem:[#allocation19 + $0xf8] sm:$0xf0] }
 0x318   :  { %v3762_v62 = vor.u32 %v4366_v58, %v3759_v17 }
 0x319   :  { %2671 = vmatpush.bf16.msrb.mxu1 %v3682_v61  ;;  %2685 = vmatpush.bf16.msrb.mxu2 %v3938_v18  ;;  %v3749_v18 = vld [vmem:[#allocation19 + $0xd0] sm:$0xf] }
 0x31d   :  { %2672 = vmatpush.bf16.msrb.mxu1 %v3650_v11  ;;  %2686 = vmatpush.bf16.msrb.mxu2 %v3906_v24  ;;  %v4069_v11 = vld [vmem:[#allocation19 + $0x350] sm:$0xf] }
 0x31e   :  { %v4070_v22 = vor.u32 %v4449_v12, %v4069_v11  ;;  %v4037_v24 = vld [vmem:[#allocation19 + $0x310] sm:$0xf]  ;;  %v4390_v11 = vld [vmem:[#allocation19 + $0x19c] sm:$0xf]  ;;  %v3942_v12 = vor.u32 %v4417_v0, %v3941_v63  ;;  %v3725_v63 = vld [vmem:[#allocation19 + $0x98] sm:$0xf] }
 0x31f   :  { %v4038_v34 = vor.u32 %v4441_v25, %v4037_v24  ;;  %v3858_v25 = vor.u32 %v4390_v11, %v3855_v14  ;;  %v4362_v0 = vld [vmem:[#allocation19 + $0xb4] sm:$0xf0] }
 0x320   :  { %v3726_v11 = vor.u32 %v4362_v0, %v3725_v63  ;;  %v4354_v14 = vld [vmem:[#allocation19 + $0x74] sm:$0xf0] }
 0x37d   :  { %v1770_v26 = vpop.f32.mrf.mxu1 }
 0x37e   :  { %v1771_v29 = vadd.f32 %v1770_v26, %v1677_v27  ;;  %v4437_v26 = vld [vmem:[#allocation19 + $0x314] sm:$0xf] }
 0x380   :  { %v1789_v37 = vmax.f32 %v1771_v29, 0.0  ;;  %v3754_v29 = vor.u32 %v4365_v20, %v3751_v21  ;;  %v4141_v20 = vld [vmem:[#allocation19 + $0x3d8] sm:$0xf] }
 0x381   :  { %v4466_v21 = vld [vmem:[#allocation19 + $0x3f4] sm:$0xf0] }
 0x383   :  { %v1784_v28 = vpop.f32.mrf.mxu2 }
 0x384   :  { %v1785_v45 = vadd.f32 %v1784_v28, %v1678_v30  ;;  %v3750_v28 = vor.u32 %v4369_v19, %v3749_v18  ;;  %v4405_v18 = vld [vmem:[#allocation19 + $0x214] sm:$0xf] }
 0x385   :  { %v1772_v31 = vpop.f32.mrf.mxu1  ;;  %v3911_v19 = vld [vmem:[#allocation19 + $0x230] sm:$0xf0] }
 0x386   :  { %v1773_v33 = vadd.f32 %v1772_v31, %v1677_v27  ;;  %v1790_v54 = vmax.f32 %v1785_v45, 0.0  ;;  %v4039_v27 = vld [vmem:[#allocation19 + $0x330] sm:$0xf0]  ;;  %v4361_v31 = vld [vmem:[#allocation19 + $0xac] sm:$0xf0] }
 0x387   :  { %v4042_v35 = vor.u32 %v4437_v26, %v4039_v27  ;;  %v3685_v45 = vld [vmem:[#allocation19 + $0x50] sm:$0xf]  ;;  %v3821_v26 = vld [vmem:[#allocation19 + $0x158] sm:$0xf] }
 0x388   :  { %v1791_v38 = vmax.f32 %v1773_v33, 0.0  ;;  %v3719_v33 = vld [vmem:[#allocation19 + $0xb0] sm:$0xf0] }
 0x389   :  { %v3722_v42 = vor.u32 %v4357_v32, %v3719_v33  ;;  %v4142_v32 = vor.u32 %v4466_v21, %v4141_v20  ;;  %v3981_v20 = vld [vmem:[#allocation19 + $0x298] sm:$0xf] }
 0x38a   :  { %v5024_v46 = vpack.c.bf16 %v1791_v38, %v1789_v37  ;;  %v4433_v37 = vld [vmem:[#allocation19 + $0x2ec] sm:$0xf0]  ;;  %v4429_v38 = vld [vmem:[#allocation19 + $0x2d4] sm:$0xf]  ;;  %v4426_v21 = vld [vmem:[#allocation19 + $0x2b4] sm:$0xf0] }
 0x38b   :  { %v1786_v50 = vpop.f32.mrf.mxu2 }
 0x38c   :  { %v1787_v52 = vadd.f32 %v1786_v50, %v1678_v30  ;;  %2589 = vmatmul.bf16.vlgmr.msrb.gmra.mxu3 %v5024_v46  ;;  %2617 = vmatmul.bf16.vlgmr.msra.gmra.mxu1 %v5024_v46  ;;  %v3717_v30 = vld [vmem:[#allocation19 + $0x90] sm:$0xf]  ;;  %v4006_v50 = vor.u32 %v4433_v37, %v4005_v36  ;;  %v4454_v36 = vld [vmem:[#allocation19 + $0x39c] sm:$0xf] }
 0x38d   :  { %2693 = vmatpush.bf16.msrb.mxu3 %v3878_v40  ;;  %2721 = vmatpush.bf16.msra.mxu1 %v3882_v41  ;;  %v4007_v40 = vld [vmem:[#allocation19 + $0x2f0] sm:$0xf0]  ;;  %v3718_v41 = vor.u32 %v4361_v31, %v3717_v30  ;;  %v4382_v30 = vld [vmem:[#allocation19 + $0x15c] sm:$0xf] }
 0x38e   :  { %v1792_v10 = vmax.f32 %v1787_v52, 0.0  ;;  %v4010_v51 = vor.u32 %v4429_v38, %v4007_v40  ;;  %v3973_v52 = vld [vmem:[#allocation19 + $0x290] sm:$0xf]  ;;  %v3823_v31 = vld [vmem:[#allocation19 + $0x178] sm:$0xf0] }
 0x38f   :  { %v4111_v37 = vld [vmem:[#allocation19 + $0x3b8] sm:$0xf0]  ;;  %v3826_v40 = vor.u32 %v4382_v30, %v3823_v31  ;;  %v3982_v30 = vor.u32 %v4426_v21, %v3981_v20 }
 0x390   :  { %v5028_v61 = vpack.c.bf16 %v1792_v10, %v1790_v54  ;;  %v4341_v54 = vld [vmem:[#allocation19 + $0x14] sm:$0xf] }
 0x391   :  { %2694 = vmatpush.bf16.msrb.mxu3 %v3846_v39  ;;  %2722 = vmatpush.bf16.msra.mxu1 %v3850_v47  ;;  %v3686_v39 = vor.u32 %v4353_v48, %v3685_v45  ;;  %v3690_v47 = vor.u32 %v4349_v1, %v3687_v49  ;;  %v3655_v10 = vld [vmem:[#allocation19 + $0x30] sm:$0xf0]  ;;  %v4374_v45 = vld [vmem:[#allocation19 + $0x11c] sm:$0xf]  ;;  %v4114_v49 = vor.u32 %v4454_v36, %v4111_v37 }
 0x392   :  { %2603 = vmatmul.bf16.vlgmr.msra.gmra.mxu0 %v5028_v61  ;;  %2631 = vmatmul.bf16.vlgmr.msra.gmra.mxu2 %v5028_v61  ;;  %v3658_v5 = vor.u32 %v4341_v54, %v3655_v10  ;;  %v3791_v48 = vld [vmem:[#allocation19 + $0x138] sm:$0xf0] }
 0x393   :  { %2707 = vmatpush.bf16.msra.mxu0 %v4134_v57  ;;  %2735 = vmatpush.bf16.msra.mxu2 %v4138_v59  ;;  %v3974_v57 = vor.u32 %v4425_v53, %v3973_v52  ;;  %v3978_v59 = vor.u32 %v4421_v43, %v3975_v44  ;;  %v4446_v52 = vld [vmem:[#allocation19 + $0x35c] sm:$0xf]  ;;  %v3794_v44 = vor.u32 %v4374_v45, %v3791_v48 }
 0x394   :  { %v4079_v53 = vld [vmem:[#allocation19 + $0x378] sm:$0xf0] }
 0x395   :  { %2695 = vmatpush.bf16.msrb.mxu3 %v3814_v2  ;;  %2723 = vmatpush.bf16.msra.mxu1 %v3818_v3  ;;  %v4413_v2 = vld [vmem:[#allocation19 + $0x254] sm:$0xf]  ;;  %v4082_v10 = vor.u32 %v4446_v52, %v4079_v53  ;;  %v4406_v45 = vld [vmem:[#allocation19 + $0x21c] sm:$0xf] }
 0x396   :  { %v3943_v3 = vld [vmem:[#allocation19 + $0x270] sm:$0xf0]  ;;  %v3919_v48 = vld [vmem:[#allocation19 + $0x238] sm:$0xf0] }
 0x397   :  { %2708 = vmatpush.bf16.msra.mxu0 %v4102_v8  ;;  %2736 = vmatpush.bf16.msra.mxu2 %v4106_v9  ;;  %v3853_v8 = vld [vmem:[#allocation19 + $0x198] sm:$0xf]  ;;  %v3946_v13 = vor.u32 %v4413_v2, %v3943_v3  ;;  %v4358_v2 = vld [vmem:[#allocation19 + $0x9c] sm:$0xf] }
 0x398   :  { %v4394_v9 = vld [vmem:[#allocation19 + $0x1b4] sm:$0xf0]  ;;  %v3727_v3 = vld [vmem:[#allocation19 + $0xb8] sm:$0xf0] }
 0x399   :  { %2696 = vmatpush.bf16.msrb.mxu3 %v3782_v15  ;;  %2724 = vmatpush.bf16.msra.mxu1 %v3786_v16  ;;  %v3909_v15 = vld [vmem:[#allocation19 + $0x210] sm:$0xf]  ;;  %v3854_v24 = vor.u32 %v4394_v9, %v3853_v8  ;;  %v4430_v8 = vld [vmem:[#allocation19 + $0x2dc] sm:$0xf] }
 0x39a   :  { %v4409_v16 = vld [vmem:[#allocation19 + $0x22c] sm:$0xf0]  ;;  %v4015_v9 = vld [vmem:[#allocation19 + $0x2f8] sm:$0xf0] }
 0x39b   :  { %2709 = vmatpush.bf16.msra.mxu0 %v4070_v22  ;;  %2737 = vmatpush.bf16.msra.mxu2 %v4074_v23  ;;  %v4462_v22 = vld [vmem:[#allocation19 + $0x3dc] sm:$0xf]  ;;  %v3910_v27 = vor.u32 %v4409_v16, %v3909_v15 }
 0x39c   :  { %2645 = vmatmul.bf16.vlgmr.msra.gmra.mxu3 %v5024_v46  ;;  %2673 = vmatmul.bf16.vlgmr.msrb.gmra.mxu1 %v5024_v46  ;;  %v4143_v23 = vld [vmem:[#allocation19 + $0x3f8] sm:$0xf0] }
 0x39d   :  { %2697 = vmatpush.bf16.msrb.mxu3 %v3750_v28  ;;  %2725 = vmatpush.bf16.msra.mxu1 %v3754_v29  ;;  %v3914_v28 = vor.u32 %v4405_v18, %v3911_v19  ;;  %v4386_v29 = vld [vmem:[#allocation19 + $0x174] sm:$0xf0]  ;;  %v4146_v33 = vor.u32 %v4462_v22, %v4143_v23  ;;  %v4350_v15 = vld [vmem:[#allocation19 + $0x5c] sm:$0xf]  ;;  %v4018_v19 = vor.u32 %v4430_v8, %v4015_v9 }
 0x39e   :  { %v3822_v38 = vor.u32 %v4386_v29, %v3821_v26  ;;  %v3695_v16 = vld [vmem:[#allocation19 + $0x78] sm:$0xf0]  ;;  %v3661_v26 = vld [vmem:[#allocation19 + $0x18] sm:$0xf] }
 0x39f   :  { %2710 = vmatpush.bf16.msra.mxu0 %v4038_v34  ;;  %2738 = vmatpush.bf16.msra.mxu2 %v4042_v35  ;;  %v4109_v34 = vld [vmem:[#allocation19 + $0x398] sm:$0xf]  ;;  %v4422_v22 = vld [vmem:[#allocation19 + $0x29c] sm:$0xf] }
 0x3a0   :  { %v4458_v35 = vld [vmem:[#allocation19 + $0x3b4] sm:$0xf0]  ;;  %v3983_v23 = vld [vmem:[#allocation19 + $0x2b8] sm:$0xf0] }
 0x3a1   :  { %2698 = vmatpush.bf16.msrb.mxu3 %v3718_v41  ;;  %2726 = vmatpush.bf16.msra.mxu1 %v3722_v42  ;;  %v3789_v41 = vld [vmem:[#allocation19 + $0x118] sm:$0xf]  ;;  %v4110_v1 = vor.u32 %v4458_v35, %v4109_v34  ;;  %v3663_v29 = vld [vmem:[#allocation19 + $0x38] sm:$0xf0]  ;;  %v3986_v31 = vor.u32 %v4422_v22, %v3983_v23 }
 0x3a2   :  { %2659 = vmatmul.bf16.vlgmr.msrb.gmra.mxu0 %v5028_v61  ;;  %2687 = vmatmul.bf16.vlgmr.msrb.gmra.mxu2 %v5028_v61  ;;  %v4378_v42 = vld [vmem:[#allocation19 + $0x134] sm:$0xf0]  ;;  %v4414_v34 = vld [vmem:[#allocation19 + $0x25c] sm:$0xf] }
 0x3a3   :  { %2711 = vmatpush.bf16.msra.mxu0 %v4006_v50  ;;  %2739 = vmatpush.bf16.msra.mxu2 %v4010_v51  ;;  %v4077_v50 = vld [vmem:[#allocation19 + $0x358] sm:$0xf]  ;;  %v3790_v43 = vor.u32 %v4378_v42, %v3789_v41  ;;  %v3951_v35 = vld [vmem:[#allocation19 + $0x278] sm:$0xf0] }
 0x3a4   :  { %v4450_v51 = vld [vmem:[#allocation19 + $0x374] sm:$0xf0] }
 0x3a5   :  { %2699 = vmatpush.bf16.msrb.mxu3 %v3686_v39  ;;  %2727 = vmatpush.bf16.msra.mxu1 %v3690_v47  ;;  %v3757_v39 = vld [vmem:[#allocation19 + $0xd8] sm:$0xf]  ;;  %v4078_v54 = vor.u32 %v4450_v51, %v4077_v50 }
 0x3a6   :  { %v4370_v47 = vld [vmem:[#allocation19 + $0xf4] sm:$0xf0] }
 0x3a7   :  { %2712 = vmatpush.bf16.msra.mxu0 %v3974_v57  ;;  %2740 = vmatpush.bf16.msra.mxu2 %v3978_v59  ;;  %v4438_v57 = vld [vmem:[#allocation19 + $0x31c] sm:$0xf]  ;;  %v3758_v60 = vor.u32 %v4370_v47, %v3757_v39  ;;  %v3917_v41 = vld [vmem:[#allocation19 + $0x218] sm:$0xf] }
 0x3a8   :  { %v4047_v59 = vld [vmem:[#allocation19 + $0x338] sm:$0xf0]  ;;  %v4410_v42 = vld [vmem:[#allocation19 + $0x234] sm:$0xf0] }
 0x3a9   :  { %2700 = vmatpush.bf16.msrb.mxu3 %v3654_v4  ;;  %2728 = vmatpush.bf16.msra.mxu1 %v3658_v5  ;;  %v4046_v4 = vor.u32 %v4442_v56, %v4045_v55  ;;  %v4050_v5 = vor.u32 %v4438_v57, %v4047_v59 }
 0x3ab   :  { %2713 = vmatpush.bf16.msra.mxu0 %v3942_v12  ;;  %2741 = vmatpush.bf16.msra.mxu2 %v3946_v13  ;;  %v3730_v12 = vor.u32 %v4358_v2, %v3727_v3  ;;  %v3693_v13 = vld [vmem:[#allocation19 + $0x58] sm:$0xf] }
 0x3ac   :  { %2701 = vmatmul.bf16.vlgmr.msrb.gmra.mxu3 %v5024_v46  ;;  %2729 = vmatmul.bf16.vlgmr.msra.gmra.mxu1 %v5024_v46 }
 0x3ad   :  { %2749 = vmatpush.bf16.msra.mxu3 %v3886_v6  ;;  %2777 = vmatpush.bf16.msrb.mxu1 %v3890_v7  ;;  %v4013_v6 = vld [vmem:[#allocation19 + $0x2d8] sm:$0xf] }
 0x3ae   :  { %v4434_v7 = vld [vmem:[#allocation19 + $0x2f4] sm:$0xf0] }
 0x3af   :  { %2714 = vmatpush.bf16.msra.mxu0 %v3910_v27  ;;  %2742 = vmatpush.bf16.msra.mxu2 %v3914_v28  ;;  %v4014_v18 = vor.u32 %v4434_v7, %v4013_v6  ;;  %v4346_v27 = vld [vmem:[#allocation19 + $0x34] sm:$0xf0]  ;;  %v4342_v28 = vld [vmem:[#allocation19 + $0x1c] sm:$0xf] }
 0x3b0   :  { %v3662_v36 = vor.u32 %v4346_v27, %v3661_v26  ;;  %v3666_v37 = vor.u32 %v4342_v28, %v3663_v29 }
 0x3b1   :  { %2750 = vmatpush.bf16.msra.mxu3 %v3854_v24  ;;  %2778 = vmatpush.bf16.msrb.mxu1 %v3858_v25  ;;  %v3694_v24 = vor.u32 %v4354_v14, %v3693_v13  ;;  %v3698_v25 = vor.u32 %v4350_v15, %v3695_v16 }
 0x3b2   :  { %2715 = vmatmul.bf16.vlgmr.msra.gmra.mxu0 %v5028_v61  ;;  %2743 = vmatmul.bf16.vlgmr.msra.gmra.mxu2 %v5028_v61 }
 0x3b3   :  { %2763 = vmatpush.bf16.msrb.mxu0 %v4142_v32  ;;  %2791 = vmatpush.bf16.msrb.mxu2 %v4146_v33  ;;  %v3949_v32 = vld [vmem:[#allocation19 + $0x258] sm:$0xf] }
 0x3b4   :  { %v4418_v33 = vld [vmem:[#allocation19 + $0x274] sm:$0xf0] }
 0x3b5   :  { %2751 = vmatpush.bf16.msra.mxu3 %v3822_v38  ;;  %2779 = vmatpush.bf16.msrb.mxu1 %v3826_v40  ;;  %v3950_v38 = vor.u32 %v4418_v33, %v3949_v32  ;;  %v3954_v40 = vor.u32 %v4414_v34, %v3951_v35 }
 0x3b7   :  { %2764 = vmatpush.bf16.msrb.mxu0 %v4110_v1  ;;  %2792 = vmatpush.bf16.msrb.mxu2 %v4114_v49  ;;  %v3918_v1 = vor.u32 %v4410_v42, %v3917_v41  ;;  %v3922_v49 = vor.u32 %v4406_v45, %v3919_v48 }
 0x3b9   :  { %2752 = vmatpush.bf16.msra.mxu3 %v3790_v43  ;;  %2780 = vmatpush.bf16.msrb.mxu1 %v3794_v44 }
 0x3bb   :  { %2765 = vmatpush.bf16.msrb.mxu0 %v4078_v54  ;;  %2793 = vmatpush.bf16.msrb.mxu2 %v4082_v10 }
 0x3bd   :  { %2753 = vmatpush.bf16.msra.mxu3 %v3758_v60  ;;  %2781 = vmatpush.bf16.msrb.mxu1 %v3762_v62 }
 0x3bf   :  { %2766 = vmatpush.bf16.msrb.mxu0 %v4046_v4  ;;  %2794 = vmatpush.bf16.msrb.mxu2 %v4050_v5 }
 0x3c1   :  { %2754 = vmatpush.bf16.msra.mxu3 %v3726_v11  ;;  %2782 = vmatpush.bf16.msrb.mxu1 %v3730_v12 }
 0x3c3   :  { %2767 = vmatpush.bf16.msrb.mxu0 %v4014_v18  ;;  %2795 = vmatpush.bf16.msrb.mxu2 %v4018_v19 }
 0x3c5   :  { %2755 = vmatpush.bf16.msra.mxu3 %v3694_v24  ;;  %2783 = vmatpush.bf16.msrb.mxu1 %v3698_v25 }
 0x3c7   :  { %2768 = vmatpush.bf16.msrb.mxu0 %v3982_v30  ;;  %2796 = vmatpush.bf16.msrb.mxu2 %v3986_v31 }
 0x3c9   :  { %2756 = vmatpush.bf16.msra.mxu3 %v3662_v36  ;;  %2784 = vmatpush.bf16.msrb.mxu1 %v3666_v37 }
 0x3cb   :  { %2769 = vmatpush.bf16.msrb.mxu0 %v3950_v38  ;;  %2797 = vmatpush.bf16.msrb.mxu2 %v3954_v40 }
 0x3cc   :  { %2757 = vmatmul.bf16.vlgmr.msra.gmra.mxu3 %v5024_v46  ;;  %2785 = vmatmul.bf16.vlgmr.msrb.gmra.mxu1 %v5024_v46  ;;  %v5050_v46 = vld [vmem:[%s5077_s13] sm:$0xff]  ;;  %s4843_s13 = smov [#allocation20]  }
 0x3cd   :  { %v1925_v51 = vperm.slane %v5050_v46, 0  ;;  %v1926_v53 = vperm.slane %v5050_v46, 1  ;;  %v1927_v60 = vperm.slane %v5050_v46, 2  ;;  %v1928_v3 = vperm.slane %v5050_v46, 3  ;;  %s2829_s15 = sshll.u32 %s4843_s13, 4  ;;  %s2830_s15 = int_to_ptr.vmem [resolvable:$true] %s2829_s15 }
 0x3ce   :  { %v1929_v16 = vperm.slane %v5050_v46, 4  ;;  %v1930_v24 = vperm.slane %v5050_v46, 5  ;;  %v1931_v37 = vperm.slane %v5050_v46, 6  ;;  %v1932_v42 = vperm.slane %v5050_v46, 7 }
 0x3cf   :  { %2770 = vmatpush.bf16.msrb.mxu0 %v3918_v1  ;;  %2798 = vmatpush.bf16.msrb.mxu2 %v3922_v49 }
 0x3d2   :  { %2771 = vmatmul.bf16.vlgmr.msrb.gmra.mxu0 %v5028_v61  ;;  %2799 = vmatmul.bf16.vlgmr.msrb.gmra.mxu2 %v5028_v61 }
 0x409   :  { %v2618_v50 = vpop.f32.mrf.mxu1 }
 0x40a   :  { %v2619_v47 = vadd.f32 %v2618_v50, %v1926_v53 }
 0x40f   :  { %v2590_v61 = vpop.f32.mrf.mxu3  ;;  %v2604_v52 = vpop.f32.mrf.mxu0 }
 0x410   :  { %v2591_v43 = vadd.f32 %v2590_v61, %v1925_v51 }
 0x411   :  { %v2620_v39 = vpop.f32.mrf.mxu1 }
 0x412   :  { %v2605_v44 = vadd.f32 %v2604_v52, %v2591_v43  ;;  %v2621_v57 = vadd.f32 %v2620_v39, %v1926_v53 }
 0x414   :  { %2805 = vst [vmem:[#allocation20] sm:$0xff] %v2605_v44 }
 0x415   :  { %v2632_v58 = vpop.f32.mrf.mxu2 }
 0x416   :  { %v2633_v17 = vadd.f32 %v2632_v58, %v2619_v47 }
 0x417   :  { %v2592_v54 = vpop.f32.mrf.mxu3  ;;  %v2606_v10 = vpop.f32.mrf.mxu0 }
 0x418   :  { %2806 = vst [vmem:[#allocation20 + $0x8] sm:$0xff] %v2633_v17  ;;  %v2593_v55 = vadd.f32 %v2592_v54, %v1925_v51 }
 0x419   :  { %v2674_v59 = vpop.f32.mrf.mxu1 }
 0x41a   :  { %v2607_v56 = vadd.f32 %v2606_v10, %v2593_v55  ;;  %v2675_v6 = vadd.f32 %v2674_v59, %v1928_v3 }
 0x41c   :  { %2813 = vst [vmem:[#allocation20 + $0x40] sm:$0xff] %v2607_v56 }
 0x41d   :  { %v2634_v62 = vpop.f32.mrf.mxu2 }
 0x41e   :  { %v2635_v63 = vadd.f32 %v2634_v62, %v2621_v57 }
 0x41f   :  { %v2646_v0 = vpop.f32.mrf.mxu3  ;;  %v2660_v2 = vpop.f32.mrf.mxu0 }
 0x420   :  { %2814 = vst [vmem:[#allocation20 + $0x48] sm:$0xff] %v2635_v63  ;;  %v2647_v4 = vadd.f32 %v2646_v0, %v1927_v60 }
 0x421   :  { %v2676_v8 = vpop.f32.mrf.mxu1 }
 0x422   :  { %v2661_v5 = vadd.f32 %v2660_v2, %v2647_v4  ;;  %v2677_v15 = vadd.f32 %v2676_v8, %v1928_v3 }
 0x424   :  { %2807 = vst [vmem:[#allocation20 + $0x10] sm:$0xff] %v2661_v5 }
 0x425   :  { %v2688_v7 = vpop.f32.mrf.mxu2 }
 0x426   :  { %v2689_v9 = vadd.f32 %v2688_v7, %v2675_v6 }
 0x427   :  { %v2648_v11 = vpop.f32.mrf.mxu3  ;;  %v2662_v12 = vpop.f32.mrf.mxu0 }
 0x428   :  { %2808 = vst [vmem:[#allocation20 + $0x18] sm:$0xff] %v2689_v9  ;;  %v2649_v13 = vadd.f32 %v2648_v11, %v1927_v60 }
 0x429   :  { %v2730_v21 = vpop.f32.mrf.mxu1 }
 0x42a   :  { %v2663_v14 = vadd.f32 %v2662_v12, %v2649_v13  ;;  %v2731_v26 = vadd.f32 %v2730_v21, %v1930_v24 }
 0x42c   :  { %2815 = vst [vmem:[#allocation20 + $0x50] sm:$0xff] %v2663_v14 }
 0x42d   :  { %v2690_v18 = vpop.f32.mrf.mxu2 }
 0x42e   :  { %v2691_v19 = vadd.f32 %v2690_v18, %v2677_v15 }
 0x42f   :  { %v2702_v20 = vpop.f32.mrf.mxu3  ;;  %v2716_v23 = vpop.f32.mrf.mxu0 }
 0x430   :  { %2816 = vst [vmem:[#allocation20 + $0x58] sm:$0xff] %v2691_v19  ;;  %v2703_v22 = vadd.f32 %v2702_v20, %v1929_v16 }
 0x431   :  { %v2732_v32 = vpop.f32.mrf.mxu1 }
 0x432   :  { %v2717_v25 = vadd.f32 %v2716_v23, %v2703_v22  ;;  %v2733_v34 = vadd.f32 %v2732_v32, %v1930_v24 }
 0x434   :  { %2809 = vst [vmem:[#allocation20 + $0x20] sm:$0xff] %v2717_v25 }
 0x435   :  { %v2744_v27 = vpop.f32.mrf.mxu2 }
 0x436   :  { %v2745_v28 = vadd.f32 %v2744_v27, %v2731_v26 }
 0x437   :  { %v2704_v29 = vpop.f32.mrf.mxu3  ;;  %v2718_v31 = vpop.f32.mrf.mxu0 }
 0x438   :  { %v2705_v30 = vadd.f32 %v2704_v29, %v1929_v16  ;;  %2810 = vst [vmem:[#allocation20 + $0x28] sm:$0xff] %v2745_v28 }
 0x43a   :  { %v2719_v33 = vadd.f32 %v2718_v31, %v2705_v30 }
 0x43c   :  { %2817 = vst [vmem:[#allocation20 + $0x60] sm:$0xff] %v2719_v33 }
 0x43d   :  { %v2746_v35 = vpop.f32.mrf.mxu2 }
 0x43e   :  { %v2747_v36 = vadd.f32 %v2746_v35, %v2733_v34 }
 0x440   :  { %2818 = vst [vmem:[#allocation20 + $0x68] sm:$0xff] %v2747_v36 }
 0x449   :  { %v2786_v38 = vpop.f32.mrf.mxu1 }
 0x44a   :  { %v2787_v1 = vadd.f32 %v2786_v38, %v1932_v42 }
 0x44f   :  { %v2758_v40 = vpop.f32.mrf.mxu3  ;;  %v2772_v41 = vpop.f32.mrf.mxu0 }
 0x450   :  { %v2759_v45 = vadd.f32 %v2758_v40, %v1931_v37 }
 0x451   :  { %v2788_v52 = vpop.f32.mrf.mxu1 }
 0x452   :  { %v2773_v48 = vadd.f32 %v2772_v41, %v2759_v45  ;;  %v2789_v44 = vadd.f32 %v2788_v52, %v1932_v42 }
 0x454   :  { %2811 = vst [vmem:[#allocation20 + $0x30] sm:$0xff] %v2773_v48 }
 0x455   :  { %v2800_v49 = vpop.f32.mrf.mxu2 }
 0x456   :  { %v2801_v50 = vadd.f32 %v2800_v49, %v2787_v1 }
 0x457   :  { %v2760_v51 = vpop.f32.mrf.mxu3  ;;  %v2774_v53 = vpop.f32.mrf.mxu0 }
 0x458   :  { %2812 = vst [vmem:[#allocation20 + $0x38] sm:$0xff] %v2801_v50  ;;  %v2761_v61 = vadd.f32 %v2760_v51, %v1931_v37 }
 0x45a   :  { %v2775_v43 = vadd.f32 %v2774_v53, %v2761_v61 }
 0x45c   :  { %2819 = vst [vmem:[#allocation20 + $0x70] sm:$0xff] %v2775_v43 }
 0x45d   :  { %v2802_v46 = vpop.f32.mrf.mxu2 }
 0x45e   :  { %v2803_v39 = vadd.f32 %v2802_v46, %v2789_v44 }
 0x460   :  { %2820 = vst [vmem:[#allocation20 + $0x78] sm:$0xff] %v2803_v39 }
 0x461   :  { %2837 = dma.vmem_to_hbm [thread:$0]  %s2830_s15, 2048, %s2832_s2, [#allocation4], %s4844_s4, %s4844_s4, %s4827_s1  }
 0x462   :  { %4819 = dma.done.wait [#allocation4], 2048  }
 0x463   :  { %4820 = vsyncadd [#allocation4], 4294965248 }
 0x464   :  { %4821 = dma.done.wait [#allocation22], 512  }
 0x465   :  { %4822 = vsyncadd [#allocation22], 4294966784 }
 0x466   :  { %2859 = vsyncpa [#allocation3], 1 }
 0x467   :  { %2860 = vsyncpa [#allocation6], 1 }
 0x468   :  { %2861 = vsyncpa [#allocation9], 1 }
 0x469   :  { %2862 = vsyncpa [#allocation12], 1 }
 0x46a   :  { %2863 = vsyncpa [#allocation15], 1 }
 0x46b   :  { %2864 = vsyncpa [#allocation18], 1 }
 0x46c   :  { %2865 = vsyncpa [#allocation4], 1 }
 0x46d   :  { %2866 = vsyncpa [#allocation22], 1 }

</bundles_post_ra>
